<compile_context>
chip_gen: v7x
topology: tpu7x:2x2x1
jax: 0.10.0
libtpu: 0.0.40
codegen_flags: <defaults>
</compile_context>

<pallas_src>
import functools
import math

import jax
import jax.numpy as jnp
from jax.experimental import pallas as pl
from jax.experimental.pallas import tpu as pltpu


def _gcn_sage_kernel(h_ref, D_ref, msg_ref, norm_ref,
                     wh_ref, wm_ref, b_ref, gamma_ref, beta_ref,
                     out_ref, acc_ref, *, out_feats):
    k = pl.program_id(1)

    @pl.when(k == 0)
    def _():
        acc_ref[...] = jnp.zeros_like(acc_ref)

    # Mailbox sum over incoming edges for this (node tile, edge tile):
    #   ah[n, :] += sum_e D[n, e] * msg[e, :]
    # D/msg are already in the compute dtype (host-side cast).
    acc_ref[...] += jnp.dot(D_ref[...], msg_ref[...],
                            preferred_element_type=jnp.float32)

    @pl.when(k == pl.num_programs(1) - 1)
    def _():
        ah = acc_ref[...] * norm_ref[...]                       # [tn, 24] (f32)

        # Linear(cat(h, ah)) with the weight split along its input dim.
        lin = (jnp.dot(h_ref[...], wh_ref[...],
                       preferred_element_type=jnp.float32)
               + jnp.dot(ah.astype(wm_ref.dtype), wm_ref[...],
                         preferred_element_type=jnp.float32)
               + b_ref[...])                                    # [tn, OUTP] (f32)

        # LayerNorm over the real out_feats.  Padded weight/bias columns are
        # zero, so lin == 0 in the padding lanes; sums over the full lane
        # width equal sums over the real columns -> no mask needed.
        inv_n = 1.0 / float(out_feats)
        mean = jnp.sum(lin, axis=-1, keepdims=True) * inv_n
        var = jnp.sum(lin * lin, axis=-1, keepdims=True) * inv_n - mean * mean
        y = (lin - mean) * jax.lax.rsqrt(var + 1e-5)
        y = y * gamma_ref[...] + beta_ref[...]                  # padded lanes -> 0

        out_ref[...] = jnp.maximum(y, 0.0).astype(out_ref.dtype)


def gcn_sage_layer(h, msg, D, norm, w_full, b, gamma, beta, *,
                   out_feats, tile_n=256, tile_e=2048,
                   compute_dtype=jnp.float32):
    """h:[N,F]  msg:[E,24]  D:[N,E] dst-incidence  norm:[N,1]
       w_full:[out_feats, F+24] (torch Linear layout), b/gamma/beta:[out_feats]."""
    N, in_feats = h.shape
    E, msg_feats = msg.shape

    # Lane-dense output: pad the feature dim up to a multiple of 128.
    outp = ((out_feats + 127) // 128) * 128

    # Split + transpose + pad the weight; pad bias / LayerNorm affine params.
    w_t = jnp.transpose(w_full).astype(jnp.float32)                        # [F+24, out]
    w_h = jnp.zeros((in_feats, outp), jnp.float32).at[:, :out_feats].set(w_t[:in_feats])
    w_m = jnp.zeros((msg_feats, outp), jnp.float32).at[:, :out_feats].set(w_t[in_feats:])
    b_p = jnp.zeros((1, outp), jnp.float32).at[:, :out_feats].set(b.reshape(1, -1))
    g_p = jnp.zeros((1, outp), jnp.float32).at[:, :out_feats].set(gamma.reshape(1, -1))
    be_p = jnp.zeros((1, outp), jnp.float32).at[:, :out_feats].set(beta.reshape(1, -1))
    w_h = w_h.astype(compute_dtype)
    w_m = w_m.astype(compute_dtype)

    # ---- tile selection -----------------------------------------------------
    def round_up(x, m):
        return ((x + m - 1) // m) * m

    tile_n = min(tile_n, round_up(N, 128))
    # Force >= 2 node tiles when possible so the "parallel" axis is sharded
    # across both TensorCores on v7x.
    while tile_n > 128 and round_up(N, tile_n) // tile_n < 2:
        tile_n //= 2
    tile_e = min(tile_e, round_up(E, 256))

    # ---- host-side padding + dtype casts (compute dtype for matmul operands)
    def pad_ax(x, axis, mult):
        r = (-x.shape[axis]) % mult
        if r == 0:
            return x
        widths = [(0, 0)] * x.ndim
        widths[axis] = (0, r)
        return jnp.pad(x, widths)

    h_p = pad_ax(h, 0, tile_n).astype(compute_dtype)
    norm_p = pad_ax(norm, 0, tile_n).astype(jnp.float32)
    D_p = pad_ax(pad_ax(D, 0, tile_n), 1, tile_e).astype(compute_dtype)
    msg_p = pad_ax(msg, 0, tile_e).astype(compute_dtype)
    Np, Ep = D_p.shape

    grid = (Np // tile_n, Ep // tile_e)

    # ---- VMEM budget (double-buffered inputs/outputs + resident weights) ----
    cd_size = jnp.dtype(compute_dtype).itemsize
    vmem_need = (
        2 * tile_n * tile_e * cd_size           # D blocks (streamed, dominant)
        + 2 * tile_e * msg_feats * cd_size      # msg blocks
        + 2 * tile_n * in_feats * cd_size       # h blocks
        + 2 * tile_n * 4                        # norm blocks
        + (in_feats + msg_feats) * outp * cd_size   # resident weights
        + 3 * outp * 4                          # bias / gamma / beta
        + 2 * tile_n * outp * 4                 # output blocks
        + tile_n * msg_feats * 4                # accumulator scratch
    )
    vmem_limit = int(min(max(2 * vmem_need, 32 * 1024 * 1024), 48 * 1024 * 1024))

    kernel = functools.partial(_gcn_sage_kernel, out_feats=out_feats)

    cost = pl.CostEstimate(
        flops=2 * Np * Ep * msg_feats + 2 * Np * (in_feats + msg_feats) * outp,
        transcendentals=Np,
        bytes_accessed=(h_p.nbytes + D_p.nbytes + msg_p.nbytes + norm_p.nbytes
                        + w_h.nbytes + w_m.nbytes + 3 * b_p.nbytes
                        + Np * outp * 4))

    out = pl.pallas_call(
        kernel,
        out_shape=jax.ShapeDtypeStruct((Np, outp), jnp.float32),
        grid_spec=pltpu.PrefetchScalarGridSpec(
            num_scalar_prefetch=0,
            grid=grid,
            in_specs=[
                pl.BlockSpec((tile_n, in_feats), lambda i, k: (i, 0)),    # h
                pl.BlockSpec((tile_n, tile_e), lambda i, k: (i, k)),      # D (streamed)
                pl.BlockSpec((tile_e, msg_feats), lambda i, k: (k, 0)),   # msg
                pl.BlockSpec((tile_n, 1), lambda i, k: (i, 0)),           # norm
                pl.BlockSpec((in_feats, outp), lambda i, k: (0, 0)),      # W_h   (resident)
                pl.BlockSpec((msg_feats, outp), lambda i, k: (0, 0)),     # W_msg (resident)
                pl.BlockSpec((1, outp), lambda i, k: (0, 0)),             # bias
                pl.BlockSpec((1, outp), lambda i, k: (0, 0)),             # gamma
                pl.BlockSpec((1, outp), lambda i, k: (0, 0)),             # beta
            ],
            out_specs=pl.BlockSpec((tile_n, outp), lambda i, k: (i, 0)),
            scratch_shapes=[pltpu.VMEM((tile_n, msg_feats), jnp.float32)],
        ),
        compiler_params=pltpu.CompilerParams(
            dimension_semantics=("parallel", "arbitrary"),
            vmem_limit_bytes=vmem_limit),
        cost_estimate=cost,
    )(h_p, D_p, msg_p, norm_p, w_h, w_m, b_p, g_p, be_p)

    return out[:N, :out_feats]


if __name__ == "__main__":
    # Small deterministic problem consistent with the module:
    #   msg dim = 6 (Geometric) + 1 (distance) + 1 (angle) + 8 (feat) + 8 (discrete) = 24
    N = 256          # nodes
    E = 512          # edges
    in_feats = 40    # node feature dim fed to forward()
    G, B_ANG, DISC = 6, 8, 8
    out_feats = 32

    key = jax.random.PRNGKey(0)
    keys = jax.random.split(key, 10)

    h = jax.random.normal(keys[0], (N, in_feats), dtype=jnp.float32)
    geo = jax.random.normal(keys[1], (N, G), dtype=jnp.float32)
    src = jax.random.randint(keys[2], (E,), 0, N)
    dst = jax.random.randint(keys[3], (E,), 0, N)
    distance = jax.random.uniform(keys[4], (E,), dtype=jnp.float32)   # Tresh_distance=True path
    angle = jax.random.uniform(keys[5], (E,), dtype=jnp.float32)
    bin_angles = jax.random.normal(keys[6], (E, B_ANG), dtype=jnp.float32)
    discrete = jax.random.normal(keys[7], (E, DISC), dtype=jnp.float32)

    # Host-side (plain XLA) glue: edge-message gather/concat, dense incidence, norm.
    msg = jnp.concatenate(
        [geo[src], distance[:, None], angle[:, None], bin_angles, discrete], axis=1)  # [E, 24]
    D = (dst[None, :] == jnp.arange(N)[:, None]).astype(jnp.float32)                  # [N, E]
    in_deg = D.sum(axis=1, keepdims=True)
    norm = 1.0 / jnp.maximum(in_deg, 1.0)                                              # g.ndata['norm']

    # Parameters (reset_parameters: uniform(-stdv, stdv)); LayerNorm affine defaults.
    lin_in = in_feats + 24
    stdv = 1.0 / math.sqrt(lin_in)
    W = jax.random.uniform(keys[8], (out_feats, lin_in), dtype=jnp.float32,
                           minval=-stdv, maxval=stdv)
    b = jax.random.uniform(keys[9], (out_feats,), dtype=jnp.float32,
                           minval=-stdv, maxval=stdv)
    gamma = jnp.ones((out_feats,), dtype=jnp.float32)
    beta = jnp.zeros((out_feats,), dtype=jnp.float32)

    # Pallas kernel.  f32 matmul operands here so the tight correctness check
    # holds; pass compute_dtype=jnp.bfloat16 on v6e/v7x for full-rate MXU and
    # half the HBM bytes on the dominant D stream (results then only match the
    # f32 reference to bf16 precision, which is expected).
    out = gcn_sage_layer(h, msg, D, norm, W, b, gamma, beta,
                         out_feats=out_feats, tile_n=256, tile_e=2048,
                         compute_dtype=jnp.float32)
    out = jax.block_until_ready(out)

    # Pure-JAX reference (exact module semantics).
    ah = D @ msg
    x = jnp.concatenate([h, ah * norm], axis=1)
    lin = x @ W.T + b
    mu = lin.mean(-1, keepdims=True)
    var = ((lin - mu) ** 2).mean(-1, keepdims=True)
    ref = jnp.maximum((lin - mu) / jnp.sqrt(var + 1e-5) * gamma + beta, 0.0)

    assert out.shape == (N, out_feats)
    assert jnp.allclose(out, ref, atol=1e-4, rtol=1e-4), "mismatch vs reference"
    print("KERNEL_OK")
</pallas_src>

<mosaic_0001>
module attributes {stable_mosaic.version = 11 : i64} {
  func.func @_gcn_sage_kernel(%arg0: i32, %arg1: i32, %arg2: memref<128x40xf32, #tpu.memory_space<vmem>>, %arg3: memref<128x512xf32, #tpu.memory_space<vmem>>, %arg4: memref<512x24xf32, #tpu.memory_space<vmem>>, %arg5: memref<128x1xf32, #tpu.memory_space<vmem>>, %arg6: memref<40x128xf32, #tpu.memory_space<vmem>>, %arg7: memref<24x128xf32, #tpu.memory_space<vmem>>, %arg8: memref<1x128xf32, #tpu.memory_space<vmem>>, %arg9: memref<1x128xf32, #tpu.memory_space<vmem>>, %arg10: memref<1x128xf32, #tpu.memory_space<vmem>>, %arg11: memref<128x128xf32, #tpu.memory_space<vmem>>, %arg12: memref<128x24xf32, #tpu.memory_space<vmem>>) attributes {dimension_semantics = [#tpu.dimension_semantics<parallel>, #tpu.dimension_semantics<arbitrary>], iteration_bounds = array<i64: 2, 1>, scalar_prefetch = 0 : i64, scratch_operands = 1 : i64, tpu.core_type = #tpu.core_type<tc>, window_params = [{transform_indices = @transform_0, window_bounds = array<i64: 128, 40>}, {transform_indices = @transform_1, window_bounds = array<i64: 128, 512>}, {transform_indices = @transform_2, window_bounds = array<i64: 512, 24>}, {transform_indices = @transform_3, window_bounds = array<i64: 128, 1>}, {pipeline_mode = #tpu.pipeline_mode<synchronous>, transform_indices = @transform_4, window_bounds = array<i64: 40, 128>}, {pipeline_mode = #tpu.pipeline_mode<synchronous>, transform_indices = @transform_5, window_bounds = array<i64: 24, 128>}, {pipeline_mode = #tpu.pipeline_mode<synchronous>, transform_indices = @transform_6, window_bounds = array<i64: 1, 128>}, {pipeline_mode = #tpu.pipeline_mode<synchronous>, transform_indices = @transform_7, window_bounds = array<i64: 1, 128>}, {pipeline_mode = #tpu.pipeline_mode<synchronous>, transform_indices = @transform_8, window_bounds = array<i64: 1, 128>}, {transform_indices = @transform_9, window_bounds = array<i64: 128, 128>}]} {
    %c0_i32 = arith.constant 0 : i32
    %0 = arith.cmpi eq, %arg1, %c0_i32 : i32
    %1 = arith.extui %0 : i1 to i32
    %c0_i32_0 = arith.constant 0 : i32
    %2 = arith.cmpi ne, %1, %c0_i32_0 : i32
    scf.if %2 {
      %cst_10 = arith.constant 0.000000e+00 : f32
      %12 = vector.broadcast %cst_10 : f32 to vector<128x24xf32>
      %c0_11 = arith.constant 0 : index
      %c0_12 = arith.constant 0 : index
      %13 = vector.load %arg12[%c0_11, %c0_12] : memref<128x24xf32, #tpu.memory_space<vmem>>, vector<128x24xf32>
      tpu.vector_store %arg12[%c0_11, %c0_12], %12 {strides = array<i32>} : memref<128x24xf32, #tpu.memory_space<vmem>>, vector<128x24xf32>,
    } else {
    }
    %c0 = arith.constant 0 : index
    %c0_1 = arith.constant 0 : index
    %3 = vector.load %arg12[%c0, %c0_1] : memref<128x24xf32, #tpu.memory_space<vmem>>, vector<128x24xf32>
    %c0_2 = arith.constant 0 : index
    %c0_3 = arith.constant 0 : index
    %4 = vector.load %arg3[%c0_2, %c0_3] : memref<128x512xf32, #tpu.memory_space<vmem>>, vector<128x512xf32>
    %c0_4 = arith.constant 0 : index
    %c0_5 = arith.constant 0 : index
    %5 = vector.load %arg4[%c0_4, %c0_5] : memref<512x24xf32, #tpu.memory_space<vmem>>, vector<512x24xf32>
    %cst = arith.constant dense<0.000000e+00> : vector<128x24xf32>
    %6 = tpu.matmul %4, %5, %cst {dimension_numbers = #tpu.dot_dimension_numbers<[1], [0], [0], [1], [0, 0, 1, 1], [], []>} : vector<128x512xf32>, vector<512x24xf32>, vector<128x24xf32> -> vector<128x24xf32>
    %7 = arith.addf %3, %6 : vector<128x24xf32>
    %c0_6 = arith.constant 0 : index
    %c0_7 = arith.constant 0 : index
    %8 = vector.load %arg12[%c0_6, %c0_7] : memref<128x24xf32, #tpu.memory_space<vmem>>, vector<128x24xf32>
    tpu.vector_store %arg12[%c0_6, %c0_7], %7 {strides = array<i32>} : memref<128x24xf32, #tpu.memory_space<vmem>>, vector<128x24xf32>,
    %c0_i32_8 = arith.constant 0 : i32
    %9 = arith.cmpi eq, %arg1, %c0_i32_8 : i32
    %10 = arith.extui %9 : i1 to i32
    %c0_i32_9 = arith.constant 0 : i32
    %11 = arith.cmpi ne, %10, %c0_i32_9 : i32
    scf.if %11 {
      %c0_10 = arith.constant 0 : index
      %c0_11 = arith.constant 0 : index
      %12 = vector.load %arg12[%c0_10, %c0_11] : memref<128x24xf32, #tpu.memory_space<vmem>>, vector<128x24xf32>
      %c0_12 = arith.constant 0 : index
      %c0_13 = arith.constant 0 : index
      %13 = vector.load %arg5[%c0_12, %c0_13] : memref<128x1xf32, #tpu.memory_space<vmem>>, vector<128x1xf32>
      %14 = vector.broadcast %13 : vector<128x1xf32> to vector<128x24xf32>
      %15 = arith.mulf %12, %14 : vector<128x24xf32>
      %c0_14 = arith.constant 0 : index
      %c0_15 = arith.constant 0 : index
      %16 = vector.load %arg2[%c0_14, %c0_15] : memref<128x40xf32, #tpu.memory_space<vmem>>, vector<128x40xf32>
      %c0_16 = arith.constant 0 : index
      %c0_17 = arith.constant 0 : index
      %17 = vector.load %arg6[%c0_16, %c0_17] : memref<40x128xf32, #tpu.memory_space<vmem>>, vector<40x128xf32>
      %cst_18 = arith.constant dense<0.000000e+00> : vector<128x128xf32>
      %18 = tpu.matmul %16, %17, %cst_18 {dimension_numbers = #tpu.dot_dimension_numbers<[1], [0], [0], [1], [0, 0, 1, 1], [], []>} : vector<128x40xf32>, vector<40x128xf32>, vector<128x128xf32> -> vector<128x128xf32>
      %c0_19 = arith.constant 0 : index
      %c0_20 = arith.constant 0 : index
      %19 = vector.load %arg7[%c0_19, %c0_20] : memref<24x128xf32, #tpu.memory_space<vmem>>, vector<24x128xf32>
      %cst_21 = arith.constant dense<0.000000e+00> : vector<128x128xf32>
      %20 = tpu.matmul %15, %19, %cst_21 {dimension_numbers = #tpu.dot_dimension_numbers<[1], [0], [0], [1], [0, 0, 1, 1], [], []>} : vector<128x24xf32>, vector<24x128xf32>, vector<128x128xf32> -> vector<128x128xf32>
      %21 = arith.addf %18, %20 : vector<128x128xf32>
      %c0_22 = arith.constant 0 : index
      %c0_23 = arith.constant 0 : index
      %22 = vector.load %arg8[%c0_22, %c0_23] : memref<1x128xf32, #tpu.memory_space<vmem>>, vector<1x128xf32>
      %23 = vector.broadcast %22 : vector<1x128xf32> to vector<128x128xf32>
      %24 = arith.addf %21, %23 : vector<128x128xf32>
      %cst_24 = arith.constant dense<0.000000e+00> : vector<128xf32>
      %25 = vector.multi_reduction <add>, %24, %cst_24 [1] : vector<128x128xf32> to vector<128xf32>
      %26 = vector.shape_cast %25 : vector<128xf32> to vector<128x1xf32>
      %cst_25 = arith.constant 3.125000e-02 : f32
      %27 = vector.broadcast %cst_25 : f32 to vector<128x1xf32>
      %28 = arith.mulf %26, %27 : vector<128x1xf32>
      %29 = arith.mulf %24, %24 : vector<128x128xf32>
      %cst_26 = arith.constant dense<0.000000e+00> : vector<128xf32>
      %30 = vector.multi_reduction <add>, %29, %cst_26 [1] : vector<128x128xf32> to vector<128xf32>
      %31 = vector.shape_cast %30 : vector<128xf32> to vector<128x1xf32>
      %cst_27 = arith.constant 3.125000e-02 : f32
      %32 = vector.broadcast %cst_27 : f32 to vector<128x1xf32>
      %33 = arith.mulf %31, %32 : vector<128x1xf32>
      %34 = arith.mulf %28, %28 : vector<128x1xf32>
      %35 = arith.subf %33, %34 : vector<128x1xf32>
      %36 = vector.broadcast %28 : vector<128x1xf32> to vector<128x128xf32>
      %37 = arith.subf %24, %36 : vector<128x128xf32>
      %cst_28 = arith.constant 9.99999974E-6 : f32
      %38 = vector.broadcast %cst_28 : f32 to vector<128x1xf32>
      %39 = arith.addf %35, %38 : vector<128x1xf32>
      %40 = math.rsqrt %39 : vector<128x1xf32>
      %41 = vector.broadcast %40 : vector<128x1xf32> to vector<128x128xf32>
      %42 = arith.mulf %37, %41 : vector<128x128xf32>
      %c0_29 = arith.constant 0 : index
      %c0_30 = arith.constant 0 : index
      %43 = vector.load %arg9[%c0_29, %c0_30] : memref<1x128xf32, #tpu.memory_space<vmem>>, vector<1x128xf32>
      %44 = vector.broadcast %43 : vector<1x128xf32> to vector<128x128xf32>
      %45 = arith.mulf %42, %44 : vector<128x128xf32>
      %c0_31 = arith.constant 0 : index
      %c0_32 = arith.constant 0 : index
      %46 = vector.load %arg10[%c0_31, %c0_32] : memref<1x128xf32, #tpu.memory_space<vmem>>, vector<1x128xf32>
      %47 = vector.broadcast %46 : vector<1x128xf32> to vector<128x128xf32>
      %48 = arith.addf %45, %47 : vector<128x128xf32>
      %cst_33 = arith.constant 0.000000e+00 : f32
      %49 = vector.broadcast %cst_33 : f32 to vector<128x128xf32>
      %50 = arith.maximumf %48, %49 : vector<128x128xf32>
      %c0_34 = arith.constant 0 : index
      %c0_35 = arith.constant 0 : index
      %51 = vector.load %arg11[%c0_34, %c0_35] : memref<128x128xf32, #tpu.memory_space<vmem>>, vector<128x128xf32>
      tpu.vector_store %arg11[%c0_34, %c0_35], %50 {strides = array<i32>} : memref<128x128xf32, #tpu.memory_space<vmem>>, vector<128x128xf32>,
    } else {
    }
    return
  }
  func.func @transform_0(%arg0: i32, %arg1: i32) -> (i32, i32) {
    %c0_i32 = arith.constant 0 : i32
    %c0_i32_0 = arith.constant 0 : i32
    return %arg0, %c0_i32 : i32, i32
  }
  func.func @transform_1(%arg0: i32, %arg1: i32) -> (i32, i32) {
    %c0_i32 = arith.constant 0 : i32
    return %arg0, %arg1 : i32, i32
  }
  func.func @transform_2(%arg0: i32, %arg1: i32) -> (i32, i32) {
    %c0_i32 = arith.constant 0 : i32
    %c0_i32_0 = arith.constant 0 : i32
    return %arg1, %c0_i32 : i32, i32
  }
  func.func @transform_3(%arg0: i32, %arg1: i32) -> (i32, i32) {
    %c0_i32 = arith.constant 0 : i32
    %c0_i32_0 = arith.constant 0 : i32
    return %arg0, %c0_i32 : i32, i32
  }
  func.func @transform_4(%arg0: i32, %arg1: i32) -> (i32, i32) {
    %c0_i32 = arith.constant 0 : i32
    %c0_i32_0 = arith.constant 0 : i32
    %c0_i32_1 = arith.constant 0 : i32
    return %c0_i32, %c0_i32_0 : i32, i32
  }
  func.func @transform_5(%arg0: i32, %arg1: i32) -> (i32, i32) {
    %c0_i32 = arith.constant 0 : i32
    %c0_i32_0 = arith.constant 0 : i32
    %c0_i32_1 = arith.constant 0 : i32
    return %c0_i32, %c0_i32_0 : i32, i32
  }
  func.func @transform_6(%arg0: i32, %arg1: i32) -> (i32, i32) {
    %c0_i32 = arith.constant 0 : i32
    %c0_i32_0 = arith.constant 0 : i32
    %c0_i32_1 = arith.constant 0 : i32
    return %c0_i32, %c0_i32_0 : i32, i32
  }
  func.func @transform_7(%arg0: i32, %arg1: i32) -> (i32, i32) {
    %c0_i32 = arith.constant 0 : i32
    %c0_i32_0 = arith.constant 0 : i32
    %c0_i32_1 = arith.constant 0 : i32
    return %c0_i32, %c0_i32_0 : i32, i32
  }
  func.func @transform_8(%arg0: i32, %arg1: i32) -> (i32, i32) {
    %c0_i32 = arith.constant 0 : i32
    %c0_i32_0 = arith.constant 0 : i32
    %c0_i32_1 = arith.constant 0 : i32
    return %c0_i32, %c0_i32_0 : i32, i32
  }
  func.func @transform_9(%arg0: i32, %arg1: i32) -> (i32, i32) {
    %c0_i32 = arith.constant 0 : i32
    %c0_i32_0 = arith.constant 0 : i32
    return %arg0, %c0_i32 : i32, i32
  }
}

</mosaic_0001>

<bundles_post_ra>
// kernel: tpu_custom_call.1
= control target key start
LH: loop header
LB: loop body
LE: loop exit
PB: predicated region body
PF: predicated region fallthrough
CT: control target
= control target key end

     0   :  { %14 = vsyncpa [#allocation4], 0  ;;  %s3344_s0 = inlined_call_operand.vmem [shape: f32[256,40], index: 0, kind: input, shape index: {}]   ;;  %s3345_s1 = inlined_call_operand.vmem [shape: f32[256,512], index: 1, kind: input, shape index: {}]   ;;  %s3346_s2 = inlined_call_operand.vmem [shape: f32[512,24], index: 2, kind: input, shape index: {}]   ;;  %s3347_s3 = inlined_call_operand.vmem [shape: f32[256,1], index: 3, kind: input, shape index: {}]   ;;  %s3348_s4 = inlined_call_operand.vmem [shape: f32[40,128], index: 4, kind: input, shape index: {}]   ;;  %s3349_s5 = inlined_call_operand.vmem [shape: f32[24,128], index: 5, kind: input, shape index: {}]   ;;  %s3350_s6 = inlined_call_operand.vmem [shape: f32[1,128], index: 6, kind: input, shape index: {}]   ;;  %s3351_s7 = inlined_call_operand.vmem [shape: f32[1,128], index: 7, kind: input, shape index: {}]   ;;  %s3352_s8 = inlined_call_operand.vmem [shape: f32[1,128], index: 8, kind: input, shape index: {}]   ;;  %s3353_s9 = inlined_call_operand.hbm [shape: f32[256,128], index: 9, kind: output, shape index: {}]  }
   0x1   :  { %16 = vsyncpa [#allocation4 + $0x1], 0  ;;  %s2555_s30 = smov 0   ;;  %s2557_s10 = smov 0  }
   0x2   :  { %s2559_s11 = smov 0   ;;  %s2561_s12 = smov 0  }
   0x3   :  { %s2563_s13 = smov 0   ;;  %s2565_s14 = smov 0  }
   0x4 LB: > { %3356 = sst [smem:[#allocation6_spill]] %s2494_s13  ;;  %s1899_s15 = sadd.s32 4294967295, %s2498_s14   ;;  %s2498_s14 = sphi %s2565_s14, %s22_s14   ;;  %s2494_s13 = sphi %s2563_s13, %s3361_s13   ;;  %s2490_s12 = sphi %s2561_s12, %s3360_s12   ;;  %s2486_s11 = sphi %s2559_s11, %s3364_s11   ;;  %s2482_s10 = sphi %s2557_s10, %s3363_s10   ;;  %s2478_s30 = sphi %s2555_s30, %s3362_s30  }
   0x5   : > { %s1900_s16 = sadd.s32 4294967294, %s2498_s14   ;;  %s34_s17 = sadd.s32 1, %s2494_s13 }
   0x6   : > { %s252_s18 = sadd.s32 1, %s2486_s11  ;;  %p36_p0 = scmp.ge.s32.totalorder %s34_s17, 2 }
   0x7   : > { %p262_p1 = scmp.ne.s32.totalorder %s2486_s11, %s2482_s10  ;;  %p263_p2 = scmp.eq.s32.totalorder %s1899_s15, 1 }
   0x8   : > { %p268_p3 = scmp.ne.s32.totalorder %s2482_s10, %s2478_s30  ;;  %s3366_s17 = smov (%p36_p0, %s34_s17), 0 }
   0x9   : > { %3357 = sst [smem:[#allocation7_spill]] %s3366_s17  ;;  %p2595_p4 = por %p263_p2, %p262_p1 }
   0xa   : > { %p269_p5 = scmp.eq.s32.totalorder %s1900_s16, 1  ;;  %s249_s20 = ssub.s32 %s2494_s13, %s3366_s17 }
   0xb   : > { %p1904_p6 = scmp.ge.s32.totalorder %s2498_s14, 1  ;;  %p250_p7 = scmp.eq.s32.totalorder %s249_s20, 0 }
   0xc   : > { %p2602_p8 = por %p269_p5, %p268_p3  ;;  %p344_p9 = scmp.lt.s32.totalorder %s2498_s14, 3 }
   0xd   : > { %s2608_s22 = scalar_select %p250_p7, %s2486_s11, %s252_s18  }
   0xe   : > { %p345_p10 = pnand %p1904_p6, %p344_p9 }
   0xf   : > { %v548_v0 = vld [vmem:[%s3346_s2 + $0x80] sm:$0xff] (!%p345_p10)  ;;  %v549_v1 = vld [vmem:[%s3346_s2 + $0x88] sm:$0xff] (!%p345_p10)  ;;  %s1906_s29 = sshll.u32 (!%p345_p10), %s2490_s12, 4  ;;  %v550_v5 = vld [vmem:[%s3346_s2 + $0x90] sm:$0xff] (!%p345_p10)  ;;  %v2500_v7 = vmov (!%p345_p10), 0   ;;  %vm435_vm0 = vcmask (!%p345_p10), 195584  }
  0x10   : > { %348 = sbr.rel (%p345_p10) target bundleno = 836 (0x344), region = 56  ;;  %v532_v2 = vld [vmem:[%s3346_s2] sm:$0xff] (!%p345_p10)  ;;  %v2219_v3 = vpack.c.bf16 (!%p345_p10), %v549_v1, %v548_v0  ;;  %v533_v4 = vld [vmem:[%s3346_s2 + $0x8] sm:$0xff] (!%p345_p10)  ;;  %v551_v6 = vld [vmem:[%s3346_s2 + $0x98] sm:$0xff] (!%p345_p10)  ;;  %p401_p11 = scmp.lt.s32.totalorder (!%p345_p10), %s1906_s29, 31  ;;  %2386 = vset.pattern.permute.xlu0 (!%p345_p10), %v2500_v7  ;;  %2387 = vset.pattern.permute.xlu1 (!%p345_p10), %v2500_v7  ;;  %vm1267_vm1 = vcmask (!%p345_p10), 326656  }
  0x11   : > { %v2221_v8 = vpack.c.bf16 (!%p345_p10), %v533_v4, %v532_v2  ;;  %v2223_v9 = vpack.c.bf16 (!%p345_p10), %v551_v6, %v550_v5  ;;  %v534_v10 = vld [vmem:[%s3346_s2 + $0x10] sm:$0xff] (!%p345_p10)  ;;  %v535_v11 = vld [vmem:[%s3346_s2 + $0x18] sm:$0xff] (!%p345_p10)  ;;  %v552_v12 = vld [vmem:[%s3346_s2 + $0xa0] sm:$0xff] (!%p345_p10)  ;;  %s397_s23 = sand.u32 (!%p345_p10), 1, %s2482_s10   ;;  %s1954_s28 = sshll.u32 (!%p345_p10), %s2490_s12, 11 }
  0x12   : > { %2295 = vmatprep.subr.bf16.mxu1 (!%p345_p10), %v2219_v3  ;;  %v553_v13 = vld [vmem:[%s3346_s2 + $0xa8] sm:$0xff] (!%p345_p10)  ;;  %2220 = vmatprep.subr.bf16.mxu0 (!%p345_p10), %v2219_v3  ;;  %v2225_v14 = vpack.c.bf16 (!%p345_p10), %v535_v11, %v534_v10  ;;  %v536_v16 = vld [vmem:[%s3346_s2 + $0x20] sm:$0xff] (!%p345_p10)  ;;  %v554_v18 = vld [vmem:[%s3346_s2 + $0xb0] sm:$0xff] (!%p345_p10)  ;;  %s1905_s25 = sshll.u32 (!%p345_p10), %s397_s23, 7  ;;  %s2502_s12 = smov (!%p345_p10), [#allocation3]  }
  0x13   : > { %2303 = vmatpush3.bf16.msra.mxu1 (!%p345_p10), %v2221_v8  ;;  %2222 = vmatpush3.bf16.msra.mxu0 (!%p345_p10), %v2221_v8  ;;  %v2227_v15 = vpack.c.bf16 (!%p345_p10), %v553_v13, %v552_v12  ;;  %v537_v17 = vld [vmem:[%s3346_s2 + $0x28] sm:$0xff] (!%p345_p10)  ;;  %v555_v19 = vld [vmem:[%s3346_s2 + $0xb8] sm:$0xff] (!%p345_p10)  ;;  %v538_v22 = vld [vmem:[%s3346_s2 + $0x30] sm:$0xff] (!%p345_p10)  ;;  %s3189_s26 = scalar_lea.vmem (!%p345_p10), [#allocation3], %s1905_s25  ;;  %s2424_s20 = sshll.u32 (!%p345_p10), %s2502_s12, 4  ;;  %s2425_s20 = int_to_ptr.vmem [resolvable:$false] %s2424_s20 }
  0x14   : > { %2296 = vmatprep.subr.bf16.mxu1 (!%p345_p10), %v2223_v9  ;;  %2224 = vmatprep.subr.bf16.mxu0 (!%p345_p10), %v2223_v9  ;;  %v2229_v20 = vpack.c.bf16 (!%p345_p10), %v537_v17, %v536_v16  ;;  %v2231_v21 = vpack.c.bf16 (!%p345_p10), %v555_v19, %v554_v18  ;;  %v539_v23 = vld [vmem:[%s3346_s2 + $0x38] sm:$0xff] (!%p345_p10)  ;;  %v556_v24 = vld [vmem:[%s3346_s2 + $0xc0] sm:$0xff] (!%p345_p10)  ;;  %v557_v25 = vld [vmem:[%s3346_s2 + $0xc8] sm:$0xff] (!%p345_p10)  ;;  %s1784_s17 = sshll.u32 (!%p345_p10), %s3189_s26, 4  ;;  %s3293_s17 = int_to_ptr.vmem [resolvable:$true] %s1784_s17 }
  0x15   : > { %v2233_v27 = vpack.c.bf16 (!%p345_p10), %v539_v23, %v538_v22  ;;  %v2235_v28 = vpack.c.bf16 (!%p345_p10), %v557_v25, %v556_v24  ;;  %v540_v29 = vld [vmem:[%s3346_s2 + $0x40] sm:$0xff] (!%p345_p10)  ;;  %v541_v30 = vld [vmem:[%s3346_s2 + $0x48] sm:$0xff] (!%p345_p10)  ;;  %v558_v31 = vld [vmem:[%s3346_s2 + $0xd0] sm:$0xff] (!%p345_p10)  ;;  %s2420_s18 = scalar_lea.vmem (!%p345_p10), %s3293_s17, 2048  ;;  %p2427_p1 = scmp.lt.s32.totalorder (!%p345_p10), %s3293_s17, %s2425_s20 }
  0x16   : > { %v559_v32 = vld [vmem:[%s3346_s2 + $0xd8] sm:$0xff] (!%p345_p10)  ;;  %v2237_v33 = vpack.c.bf16 (!%p345_p10), %v541_v30, %v540_v29  ;;  %v542_v35 = vld [vmem:[%s3346_s2 + $0x50] sm:$0xff] (!%p345_p10)  ;;  %v560_v37 = vld [vmem:[%s3346_s2 + $0xe0] sm:$0xff] (!%p345_p10)  ;;  %p2421_p12 = scmp.ne.s32.totalorder (!%p345_p10), %s3293_s17, %s2420_s18 }
  0x17   : > { %s3368_s29 = smov (!%p401_p11, %s1906_s29), 31  ;;  %2304 = vmatpush3.bf16.msra.mxu1 %v2225_v14  ;;  %2226 = vmatpush3.bf16.msra.mxu0 %v2225_v14  ;;  %v2239_v34 = vpack.c.bf16 %v559_v32, %v558_v31  ;;  %v543_v36 = vld [vmem:[%s3346_s2 + $0x58] sm:$0xff]  ;;  %v561_v38 = vld [vmem:[%s3346_s2 + $0xe8] sm:$0xff]  ;;  %v544_v41 = vld [vmem:[%s3346_s2 + $0x60] sm:$0xff] }
  0x18   : > { %s1953_s27 = sshll.u32 %s3368_s29, 5  ;;  %2297 = vmatprep.subr.bf16.mxu1 %v2227_v15  ;;  %2228 = vmatprep.subr.bf16.mxu0 %v2227_v15  ;;  %v2241_v39 = vpack.c.bf16 %v543_v36, %v542_v35  ;;  %v2243_v40 = vpack.c.bf16 %v561_v38, %v560_v37  ;;  %v545_v42 = vld [vmem:[%s3346_s2 + $0x68] sm:$0xff]  ;;  %v562_v43 = vld [vmem:[%s3346_s2 + $0xf0] sm:$0xff]  ;;  %v563_v44 = vld [vmem:[%s3346_s2 + $0xf8] sm:$0xff]  ;;  %s1907_s15 = sshll.u32 %s3368_s29, 3 }
  0x19   : > { %s2659_s13 = scalar_lea.vmem %s3345_s1, %s1953_s27  ;;  %v2245_v45 = vpack.c.bf16 %v545_v42, %v544_v41  ;;  %v2247_v46 = vpack.c.bf16 %v563_v44, %v562_v43  ;;  %v546_v47 = vld [vmem:[%s3346_s2 + $0x70] sm:$0xff]  ;;  %v547_v48 = vld [vmem:[%s3346_s2 + $0x78] sm:$0xff]  ;;  %v580_v49 = vld [vmem:[%s3346_s2 + $0x180] sm:$0xff]  ;;  %s2775_s24 = scalar_lea.vmem %s3347_s3, %s1907_s15 }
  0x1a   : > { %v501_v26 = vld [vmem:[%s2659_s13 + $0x108] sm:$0xff]  ;;  %v2249_v52 = vpack.c.bf16 %v547_v48, %v546_v47  ;;  %v564_v54 = vld [vmem:[%s3346_s2 + $0x100] sm:$0xff]  ;;  %v582_v56 = vld [vmem:[%s3346_s2 + $0x190] sm:$0xff]  ;;  %s3011_s16 = scalar_lea.vmem %s3344_s0, %s1907_s15  ;;  %s3291_s29 = scalar_lea.hbm %s3353_s9, %s1954_s28 }
  0x1b   : > { %700 = vmatprep.mubr.f32.mxu1 %v501_v26  ;;  %2305 = vmatpush3.bf16.msra.mxu1 %v2229_v20  ;;  %v581_v50 = vld [vmem:[%s3346_s2 + $0x188] sm:$0xff]  ;;  %v583_v57 = vld [vmem:[%s3346_s2 + $0x198] sm:$0xff]  ;;  %v500_v58 = vld [vmem:[%s2659_s13 + $0x100] sm:$0xff]  ;;  %s3298_s15 = scalar_lea.sflag [#allocation4], %s397_s23  ;;  %p2422_p13 = pnand %p2421_p12, %p2595_p4 }
  0x1c   : > { %2230 = vmatpush3.bf16.msra.mxu0 %v2229_v20  ;;  %2298 = vmatprep.subr.bf16.mxu1 %v2231_v21  ;;  %v469_v51 = vld [vmem:[%s2659_s13 + $0x8] sm:$0xff]  ;;  %v2251_v53 = vpack.c.bf16 %v581_v50, %v580_v49  ;;  %v468_v60 = vld [vmem:[%s2659_s13] sm:$0xff]  ;;  %v2255_v62 = vpack.c.bf16 %v583_v57, %v582_v56  ;;  %v566_v63 = vld [vmem:[%s3346_s2 + $0x110] sm:$0xff] }
  0x1d   : > { %2232 = vmatprep.subr.bf16.mxu0 %v2231_v21  ;;  %660 = vmatprep.mubr.f32.mxu0 %v469_v51  ;;  %v565_v55 = vld [vmem:[%s3346_s2 + $0x108] sm:$0xff]  ;;  %v567_v0 = vld [vmem:[%s3346_s2 + $0x118] sm:$0xff]  ;;  %v584_v1 = vld [vmem:[%s3346_s2 + $0x1a0] sm:$0xff]  ;;  %p2423_p0 = pneg %p2422_p13 }
  0x1e   : > { %v2253_v59 = vpack.c.bf16 %v565_v55, %v564_v54  ;;  %v505_v61 = vld [vmem:[%s2659_s13 + $0x128] sm:$0xff]  ;;  %v504_v4 = vld [vmem:[%s2659_s13 + $0x120] sm:$0xff]  ;;  %v2257_v5 = vpack.c.bf16 %v567_v0, %v566_v63  ;;  %v586_v11 = vld [vmem:[%s3346_s2 + $0x1b0] sm:$0xff] }
  0x1f   : > { %2306 = vmatpush3.bf16.msra.mxu1 %v2233_v27  ;;  %v585_v2 = vld [vmem:[%s3346_s2 + $0x1a8] sm:$0xff]  ;;  %v472_v6 = vld [vmem:[%s2659_s13 + $0x20] sm:$0xff]  ;;  %v587_v12 = vld [vmem:[%s3346_s2 + $0x1b8] sm:$0xff] }
  0x20   : > { %2234 = vmatpush3.bf16.msra.mxu0 %v2233_v27  ;;  %2299 = vmatprep.subr.bf16.mxu1 %v2235_v28  ;;  %v473_v3 = vld [vmem:[%s2659_s13 + $0x28] sm:$0xff]  ;;  %v2259_v8 = vpack.c.bf16 %v585_v2, %v584_v1  ;;  %v568_v9 = vld [vmem:[%s3346_s2 + $0x120] sm:$0xff]  ;;  %v2263_v18 = vpack.c.bf16 %v587_v12, %v586_v11  ;;  %v570_v19 = vld [vmem:[%s3346_s2 + $0x130] sm:$0xff] }
  0x21   : > { %2236 = vmatprep.subr.bf16.mxu0 %v2235_v28  ;;  %v509_v7 = vld [vmem:[%s2659_s13 + $0x148] sm:$0xff]  ;;  %v508_v14 = vld [vmem:[%s2659_s13 + $0x140] sm:$0xff]  ;;  %v571_v20 = vld [vmem:[%s3346_s2 + $0x138] sm:$0xff] }
  0x22   : > { %v569_v10 = vld [vmem:[%s3346_s2 + $0x128] sm:$0xff]  ;;  %v476_v16 = vld [vmem:[%s2659_s13 + $0x40] sm:$0xff]  ;;  %v940_v25 = vld [vmem:[%s2775_s24 + $0x10] sm:$0xff]  ;;  %v2265_v27 = vpack.c.bf16 %v571_v20, %v570_v19 }
  0x23   : > { %2307 = vmatpush3.bf16.msra.mxu1 %v2237_v33  ;;  %v477_v13 = vld [vmem:[%s2659_s13 + $0x48] sm:$0xff]  ;;  %v2261_v15 = vpack.c.bf16 %v569_v10, %v568_v9  ;;  %v588_v21 = vld [vmem:[%s3346_s2 + $0x1c0] sm:$0xff]  ;;  %966 = vperm.xlu1 %2387, %v940_v25   ;;  %v941_v37 = vld [vmem:[%s2775_s24 + $0x18] sm:$0xff] }
  0x24   : > { %2238 = vmatpush3.bf16.msra.mxu0 %v2237_v33  ;;  %2300 = vmatprep.subr.bf16.mxu1 %v2239_v34  ;;  %v513_v17 = vld [vmem:[%s2659_s13 + $0x168] sm:$0xff]  ;;  %v938_v24 = vld [vmem:[%s2775_s24] sm:$0xff]  ;;  %v590_v33 = vld [vmem:[%s3346_s2 + $0x1d0] sm:$0xff] }
  0x25   : > { %2240 = vmatprep.subr.bf16.mxu0 %v2239_v34  ;;  %v589_v22 = vld [vmem:[%s3346_s2 + $0x1c8] sm:$0xff]  ;;  %v512_v26 = vld [vmem:[%s2659_s13 + $0x160] sm:$0xff]  ;;  %v591_v34 = vld [vmem:[%s3346_s2 + $0x1d8] sm:$0xff]  ;;  %956 = vperm.xlu0 %2386, %v938_v24  }
  0x26   : > { %v481_v23 = vld [vmem:[%s2659_s13 + $0x68] sm:$0xff]  ;;  %v480_v28 = vld [vmem:[%s2659_s13 + $0x60] sm:$0xff]  ;;  %v2267_v30 = vpack.c.bf16 %v589_v22, %v588_v21  ;;  %v2271_v42 = vpack.c.bf16 %v591_v34, %v590_v33  ;;  %v574_v43 = vld [vmem:[%s3346_s2 + $0x150] sm:$0xff] }
  0x27   : > { %2308 = vmatpush3.bf16.msra.mxu1 %v2241_v39  ;;  %v517_v29 = vld [vmem:[%s2659_s13 + $0x188] sm:$0xff]  ;;  %v572_v31 = vld [vmem:[%s3346_s2 + $0x140] sm:$0xff]  ;;  %v575_v44 = vld [vmem:[%s3346_s2 + $0x158] sm:$0xff]  ;;  %971 = vperm.xlu1 %2387, %v941_v37  }
  0x28   : > { %2242 = vmatpush3.bf16.msra.mxu0 %v2241_v39  ;;  %2301 = vmatprep.subr.bf16.mxu1 %v2243_v40  ;;  %v573_v32 = vld [vmem:[%s3346_s2 + $0x148] sm:$0xff]  ;;  %v516_v38 = vld [vmem:[%s2659_s13 + $0x180] sm:$0xff]  ;;  %v2273_v51 = vpack.c.bf16 %v575_v44, %v574_v43  ;;  %v594_v57 = vld [vmem:[%s3346_s2 + $0x1f0] sm:$0xff] }
  0x29   : > { %2244 = vmatprep.subr.bf16.mxu0 %v2243_v40  ;;  %v485_v35 = vld [vmem:[%s2659_s13 + $0x88] sm:$0xff]  ;;  %v2269_v39 = vpack.c.bf16 %v573_v32, %v572_v31  ;;  %v484_v40 = vld [vmem:[%s2659_s13 + $0x80] sm:$0xff]  ;;  %v471_v11 = vld [vmem:[%s2659_s13 + $0x18] sm:$0xff] }
  0x2a   : > { %v939_v36 = vld [vmem:[%s2775_s24 + $0x8] sm:$0xff]  ;;  %v942_v48 = vld [vmem:[%s2775_s24 + $0x20] sm:$0xff]  ;;  %v948_v12 = vld [vmem:[%s2775_s24 + $0x50] sm:$0xff] }
  0x2b   : > { %2309 = vmatpush3.bf16.msra.mxu1 %v2245_v45  ;;  %v521_v41 = vld [vmem:[%s2659_s13 + $0x1a8] sm:$0xff]  ;;  %961 = vperm.xlu0 %2386, %v939_v36   ;;  %v520_v50 = vld [vmem:[%s2659_s13 + $0x1a0] sm:$0xff]  ;;  %v479_v19 = vld [vmem:[%s2659_s13 + $0x58] sm:$0xff] }
  0x2c   : > { %2246 = vmatpush3.bf16.msra.mxu0 %v2245_v45  ;;  %2302 = vmatprep.subr.bf16.mxu1 %v2247_v46  ;;  %v592_v45 = vld [vmem:[%s3346_s2 + $0x1e0] sm:$0xff]  ;;  %v489_v47 = vld [vmem:[%s2659_s13 + $0xa8] sm:$0xff]  ;;  %v952_v20 = vld [vmem:[%s2775_s24 + $0x70] sm:$0xff] }
  0x2d   : > { %2248 = vmatprep.subr.bf16.mxu0 %v2247_v46  ;;  %v593_v46 = vld [vmem:[%s3346_s2 + $0x1e8] sm:$0xff]  ;;  %v576_v55 = vld [vmem:[%s3346_s2 + $0x160] sm:$0xff]  ;;  %v953_v21 = vld [vmem:[%s2775_s24 + $0x78] sm:$0xff] }
  0x2e   : > { %v943_v49 = vld [vmem:[%s2775_s24 + $0x28] sm:$0xff]  ;;  %v2275_v54 = vpack.c.bf16 %v593_v46, %v592_v45  ;;  %v492_v0 = vld [vmem:[%s2659_s13 + $0xc0] sm:$0xff]  ;;  %v478_v22 = vld [vmem:[%s2659_s13 + $0x50] sm:$0xff] }
  0x2f   : > { %2310 = vmatpush3.bf16.msra.mxu1 %v2249_v52  ;;  %v577_v56 = vld [vmem:[%s3346_s2 + $0x168] sm:$0xff]  ;;  %976 = vperm.xlu0 %2386, %v942_v48   ;;  %v496_v10 = vld [vmem:[%s2659_s13 + $0xe0] sm:$0xff]  ;;  %v482_v24 = vld [vmem:[%s2659_s13 + $0x70] sm:$0xff] }
  0x30   : > { %2250 = vmatpush3.bf16.msra.mxu0 %v2249_v52  ;;  %2252 = vmatprep.subr.bf16.mxu1 %v2251_v53  ;;  %v488_v52 = vld [vmem:[%s2659_s13 + $0xa0] sm:$0xff]  ;;  %v525_v53 = vld [vmem:[%s2659_s13 + $0x1c8] sm:$0xff]  ;;  %v2277_v63 = vpack.c.bf16 %v577_v56, %v576_v55  ;;  %v487_v25 = vld [vmem:[%s2659_s13 + $0x98] sm:$0xff] }
  0x31   : > { %981 = vperm.xlu1 %2387, %v943_v49   ;;  %v529_v1 = vld [vmem:[%s2659_s13 + $0x1e8] sm:$0xff]  ;;  %v499_v31 = vld [vmem:[%s2659_s13 + $0xf8] sm:$0xff]  ;;  %v498_v32 = vld [vmem:[%s2659_s13 + $0xf0] sm:$0xff]  ;;  %v2501_v49 = vmov 0.0  }
  0x32   : > { %701 = vmatmul.mubr.f32.vlgmr.msra.gmra.mrb[0].mxu1 %v500_v58  ;;  %v595_v58 = vld [vmem:[%s3346_s2 + $0x1f8] sm:$0xff]  ;;  %v502_v34 = vld [vmem:[%s2659_s13 + $0x110] sm:$0xff]  ;;  %436 = vst.msk [vmem:[#allocation2] sm:$0xff] %vm435_vm0, %v2501_v49  ;;  %437 = vst.msk [vmem:[#allocation2 + $0x8] sm:$0xff] %vm435_vm0, %v2501_v49 }
  0x33   : > { %661 = vmatmul.mubr.f32.vlgmr.msra.gmra.mrb[0].mxu0 %v468_v60  ;;  %2254 = vmatpush3.bf16.msra.mxu1 %v2253_v59  ;;  %v493_v59 = vld [vmem:[%s2659_s13 + $0xc8] sm:$0xff]  ;;  %v944_v60 = vld [vmem:[%s2775_s24 + $0x30] sm:$0xff]  ;;  %v2279_v2 = vpack.c.bf16 %v595_v58, %v594_v57  ;;  %v503_v33 = vld [vmem:[%s2659_s13 + $0x118] sm:$0xff]  ;;  %438 = vst.msk [vmem:[#allocation2 + $0x10] sm:$0xff] %vm435_vm0, %v2501_v49 }
  0x34   : > { %705 = vmatprep.mubr.f32.mxu1 %v505_v61  ;;  %2256 = vmatprep.subr.bf16.mxu1 %v2255_v62  ;;  %v945_v61 = vld [vmem:[%s2775_s24 + $0x38] sm:$0xff]  ;;  %v524_v62 = vld [vmem:[%s2659_s13 + $0x1c0] sm:$0xff]  ;;  %v506_v36 = vld [vmem:[%s2659_s13 + $0x130] sm:$0xff]  ;;  %439 = vst.msk [vmem:[#allocation2 + $0x18] sm:$0xff] %vm435_vm0, %v2501_v49 }
  0x35   : > { %665 = vmatprep.mubr.f32.mxu0 %v473_v3  ;;  %v578_v3 = vld [vmem:[%s3346_s2 + $0x170] sm:$0xff]  ;;  %986 = vperm.xlu0 %2386, %v944_v60   ;;  %v511_v37 = vld [vmem:[%s2659_s13 + $0x158] sm:$0xff]  ;;  %440 = vst.msk [vmem:[#allocation2 + $0x20] sm:$0xff] %vm435_vm0, %v2501_v49  ;;  %441 = vst.msk [vmem:[#allocation2 + $0x28] sm:$0xff] %vm435_vm0, %v2501_v49 }
  0x36   : > { %706 = vmatmul.mubr.f32.gmra.mrb[2].mxu1 %v504_v4  ;;  %v579_v4 = vld [vmem:[%s3346_s2 + $0x178] sm:$0xff]  ;;  %991 = vperm.xlu1 %2387, %v945_v61   ;;  %v522_v44 = vld [vmem:[%s2659_s13 + $0x1b0] sm:$0xff]  ;;  %442 = vst.msk [vmem:[#allocation2 + $0x30] sm:$0xff] %vm435_vm0, %v2501_v49  ;;  %443 = vst.msk [vmem:[#allocation2 + $0x38] sm:$0xff] %vm435_vm0, %v2501_v49 }
  0x37   : > { %666 = vmatmul.mubr.f32.gmra.mrb[2].mxu0 %v472_v6  ;;  %2258 = vmatpush3.bf16.msra.mxu1 %v2257_v5  ;;  %v497_v5 = vld [vmem:[%s2659_s13 + $0xe8] sm:$0xff]  ;;  %v946_v6 = vld [vmem:[%s2775_s24 + $0x40] sm:$0xff]  ;;  %v2281_v9 = vpack.c.bf16 %v579_v4, %v578_v3  ;;  %v523_v43 = vld [vmem:[%s2659_s13 + $0x1b8] sm:$0xff]  ;;  %444 = vst.msk [vmem:[#allocation2 + $0x40] sm:$0xff] %vm435_vm0, %v2501_v49 }
  0x38   : > { %710 = vmatprep.mubr.f32.mxu1 %v509_v7  ;;  %2260 = vmatprep.subr.bf16.mxu1 %v2259_v8  ;;  %v947_v7 = vld [vmem:[%s2775_s24 + $0x48] sm:$0xff]  ;;  %v528_v8 = vld [vmem:[%s2659_s13 + $0x1e0] sm:$0xff]  ;;  %v527_v45 = vld [vmem:[%s2659_s13 + $0x1d8] sm:$0xff]  ;;  %445 = vst.msk [vmem:[#allocation2 + $0x48] sm:$0xff] %vm435_vm0, %v2501_v49 }
  0x39   : > { %670 = vmatprep.mubr.f32.mxu0 %v477_v13  ;;  %996 = vperm.xlu0 %2386, %v946_v6   ;;  %v949_v13 = vld [vmem:[%s2775_s24 + $0x58] sm:$0xff]  ;;  %v526_v46 = vld [vmem:[%s2659_s13 + $0x1d0] sm:$0xff]  ;;  %446 = vst.msk [vmem:[#allocation2 + $0x50] sm:$0xff] %vm435_vm0, %v2501_v49  ;;  %447 = vst.msk [vmem:[#allocation2 + $0x58] sm:$0xff] %vm435_vm0, %v2501_v49 }
  0x3a   : > { %711 = vmatmul.mubr.f32.gmra.mrb[4].mxu1 %v508_v14  ;;  %1001 = vperm.xlu1 %2387, %v947_v7   ;;  %v470_v14 = vld [vmem:[%s2659_s13 + $0x10] sm:$0xff]  ;;  %448 = vst.msk [vmem:[#allocation2 + $0x60] sm:$0xff] %vm435_vm0, %v2501_v49  ;;  %449 = vst.msk [vmem:[#allocation2 + $0x68] sm:$0xff] %vm435_vm0, %v2501_v49  ;;  %v1067_v55 = vld [vmem:[%s3348_s4 + $0x8] sm:$0xff] }
  0x3b   : > { %671 = vmatmul.mubr.f32.gmra.mrb[4].mxu0 %v476_v16  ;;  %2262 = vmatpush3.bf16.msra.mxu1 %v2261_v15  ;;  %v475_v15 = vld [vmem:[%s2659_s13 + $0x38] sm:$0xff]  ;;  %v950_v16 = vld [vmem:[%s2775_s24 + $0x60] sm:$0xff]  ;;  %v530_v48 = vld [vmem:[%s2659_s13 + $0x1f0] sm:$0xff]  ;;  %450 = vst.msk [vmem:[#allocation2 + $0x70] sm:$0xff] %vm435_vm0, %v2501_v49 }
  0x3c   : > { %715 = vmatprep.mubr.f32.mxu1 %v513_v17  ;;  %2264 = vmatprep.subr.bf16.mxu1 %v2263_v18  ;;  %v951_v17 = vld [vmem:[%s2775_s24 + $0x68] sm:$0xff]  ;;  %v474_v18 = vld [vmem:[%s2659_s13 + $0x30] sm:$0xff]  ;;  %451 = vst.msk [vmem:[#allocation2 + $0x78] sm:$0xff] %vm435_vm0, %v2501_v49 }
  0x3d   : > { %675 = vmatprep.mubr.f32.mxu0 %v481_v23  ;;  %1006 = vperm.xlu0 %2386, %v948_v12   ;;  %v483_v23 = vld [vmem:[%s2659_s13 + $0x78] sm:$0xff] }
  0x3e   : > { %716 = vmatmul.mubr.f32.gmra.mrb[6].mxu1 %v512_v26  ;;  %1011 = vperm.xlu1 %2387, %v949_v13   ;;  %v486_v26 = vld [vmem:[%s2659_s13 + $0x90] sm:$0xff] }
  0x3f   : > { %676 = vmatmul.mubr.f32.gmra.mrb[6].mxu0 %v480_v28  ;;  %2266 = vmatpush3.bf16.msra.mxu1 %v2265_v27  ;;  %v491_v27 = vld [vmem:[%s2659_s13 + $0xb8] sm:$0xff]  ;;  %v490_v28 = vld [vmem:[%s2659_s13 + $0xb0] sm:$0xff] }
  0x40   : > { %720 = vmatprep.mubr.f32.mxu1 %v517_v29  ;;  %2268 = vmatprep.subr.bf16.mxu1 %v2267_v30  ;;  %v495_v29 = vld [vmem:[%s2659_s13 + $0xd8] sm:$0xff]  ;;  %v494_v30 = vld [vmem:[%s2659_s13 + $0xd0] sm:$0xff] }
  0x41   : > { %680 = vmatprep.mubr.f32.mxu0 %v485_v35  ;;  %1016 = vperm.xlu0 %2386, %v950_v16   ;;  %v507_v35 = vld [vmem:[%s2659_s13 + $0x138] sm:$0xff] }
  0x42   : > { %721 = vmatmul.mubr.f32.gmra.mrb[8].mxu1 %v516_v38  ;;  %1021 = vperm.xlu1 %2387, %v951_v17   ;;  %v510_v38 = vld [vmem:[%s2659_s13 + $0x150] sm:$0xff] }
  0x43   : > { %681 = vmatmul.mubr.f32.gmra.mrb[8].mxu0 %v484_v40  ;;  %2270 = vmatpush3.bf16.msra.mxu1 %v2269_v39  ;;  %v515_v39 = vld [vmem:[%s2659_s13 + $0x178] sm:$0xff]  ;;  %v514_v40 = vld [vmem:[%s2659_s13 + $0x170] sm:$0xff] }
  0x44   : > { %725 = vmatprep.mubr.f32.mxu1 %v521_v41  ;;  %2272 = vmatprep.subr.bf16.mxu1 %v2271_v42  ;;  %v519_v41 = vld [vmem:[%s2659_s13 + $0x198] sm:$0xff]  ;;  %v518_v42 = vld [vmem:[%s2659_s13 + $0x190] sm:$0xff] }
  0x45   : > { %685 = vmatprep.mubr.f32.mxu0 %v489_v47  ;;  %1026 = vperm.xlu0 %2386, %v952_v20   ;;  %v531_v47 = vld [vmem:[%s2659_s13 + $0x1f8] sm:$0xff]  ;;  %s2426_s13 = scalar_lea.vmem %s2425_s20, 4096 }
  0x46   : > { %726 = vmatmul.mubr.f32.gmra.mrb[10].mxu1 %v520_v50  ;;  %1031 = vperm.xlu1 %2387, %v953_v21   ;;  %v1071_v50 = vld [vmem:[%s3349_s5] sm:$0xff]  ;;  %p2428_p2 = scmp.lt.s32.totalorder %s2426_s13, %s2420_s18 }
  0x47   : > { %686 = vmatmul.mubr.f32.gmra.mrb[10].mxu0 %v488_v52  ;;  %2274 = vmatpush3.bf16.msra.mxu1 %v2273_v51  ;;  %v1072_v51 = vld [vmem:[%s3349_s5 + $0x8] sm:$0xff] }
  0x48   : > { %730 = vmatprep.mubr.f32.mxu1 %v525_v53  ;;  %2276 = vmatprep.subr.bf16.mxu1 %v2275_v54  ;;  %v2283_v52 = vpack.c.bf16 %v1072_v51, %v1071_v50  ;;  %v1073_v53 = vld [vmem:[%s3349_s5 + $0x10] sm:$0xff]  ;;  %v1066_v54 = vld [vmem:[%s3348_s4] sm:$0xff]  ;;  %v453_v50 = vld [vmem:[#allocation2 + $0x8] sm:$0xff]  ;;  %p2429_p3 = por %p2428_p2, %p2427_p1 }
  0x49   : > { %690 = vmatprep.mubr.f32.mxu0 %v493_v59  ;;  %v2930_v56 = vpack.c.bf16 %v1067_v55, %v1066_v54 }
  0x4a   : > { %731 = vmatmul.mubr.f32.gmra.mrb[12].mxu1 %v524_v62  ;;  %2284 = vmatprep.subr.bf16.mxu0 %v2283_v52  ;;  %p2430_p5 = pnand %p2429_p3, %p2423_p0 }
  0x4b   : > { %691 = vmatmul.mubr.f32.gmra.mrb[12].mxu0 %v492_v0  ;;  %2278 = vmatpush3.bf16.msra.mxu1 %v2277_v63 }
  0x4c   : > { %735 = vmatprep.mubr.f32.mxu1 %v529_v1  ;;  %2280 = vmatprep.subr.bf16.mxu1 %v2279_v2 }
  0x4d   : > { %695 = vmatprep.mubr.f32.mxu0 %v497_v5  ;;  %2286 = vmatpush3.bf16.msra.mxu0 %v2283_v52 }
  0x4e   : > { %736 = vmatmul.mubr.f32.gmra.mrb[14].mxu1 %v528_v8  ;;  %2159 = vmatprep.subr.mxu0 %v1073_v53 }
  0x4f   : > { %696 = vmatmul.mubr.f32.gmra.mrb[14].mxu0 %v496_v10  ;;  %2282 = vmatpush3.bf16.msra.mxu1 %v2281_v9 }
  0x50   : > { %805 = vmatprep.mubr.f32.mxu1 %v471_v11 }
  0x51   : > { %2160 = vmatpush3.msra.mxu0 %v1073_v53 }
  0x52   : > { %806 = vmatmul.mubr.f32.vlgmr.msra.gmra.mrb[16].mxu1 %v470_v14  ;;  %2288 = vmatprep.subr.bf16.mxu0 %v2930_v56 }
  0x53   : > { %810 = vmatprep.mubr.f32.mxu1 %v475_v15 }
  0x56   : > { %811 = vmatmul.mubr.f32.gmra.mrb[18].mxu1 %v474_v18 }
  0x57   : > { %815 = vmatprep.mubr.f32.mxu1 %v479_v19 }
  0x5a   : > { %816 = vmatmul.mubr.f32.gmra.mrb[20].mxu1 %v478_v22 }
  0x5b   : > { %820 = vmatprep.mubr.f32.mxu1 %v483_v23 }
  0x5e   : > { %821 = vmatmul.mubr.f32.gmra.mrb[22].mxu1 %v482_v24 }
  0x5f   : > { %825 = vmatprep.mubr.f32.mxu1 %v487_v25 }
  0x62   : > { %826 = vmatmul.mubr.f32.gmra.mrb[24].mxu1 %v486_v26 }
  0x63   : > { %830 = vmatprep.mubr.f32.mxu1 %v491_v27 }
  0x66   : > { %831 = vmatmul.mubr.f32.gmra.mrb[26].mxu1 %v490_v28 }
  0x67   : > { %835 = vmatprep.mubr.f32.mxu1 %v495_v29 }
  0x6a   : > { %836 = vmatmul.mubr.f32.gmra.mrb[28].mxu1 %v494_v30 }
  0x6b   : > { %840 = vmatprep.mubr.f32.mxu1 %v499_v31 }
  0x6e   : > { %841 = vmatmul.mubr.f32.gmra.mrb[30].mxu1 %v498_v32 }
  0x6f   : > { %845 = vmatprep.mubr.f32.mxu1 %v503_v33 }
  0x72   : > { %846 = vmatmul.mubr.f32.gmra.mrb[32].mxu1 %v502_v34 }
  0x73   : > { %850 = vmatprep.mubr.f32.mxu1 %v507_v35 }
  0x76   : > { %851 = vmatmul.mubr.f32.gmra.mrb[34].mxu1 %v506_v36 }
  0x77   : > { %855 = vmatprep.mubr.f32.mxu1 %v511_v37 }
  0x7a   : > { %856 = vmatmul.mubr.f32.gmra.mrb[36].mxu1 %v510_v38 }
  0x7b   : > { %860 = vmatprep.mubr.f32.mxu1 %v515_v39 }
  0x7e   : > { %861 = vmatmul.mubr.f32.gmra.mrb[38].mxu1 %v514_v40 }
  0x7f   : > { %865 = vmatprep.mubr.f32.mxu1 %v519_v41 }
  0x82   : > { %866 = vmatmul.mubr.f32.gmra.mrb[40].mxu1 %v518_v42 }
  0x83   : > { %870 = vmatprep.mubr.f32.mxu1 %v523_v43 }
  0x86   : > { %871 = vmatmul.mubr.f32.gmra.mrb[42].mxu1 %v522_v44  ;;  %v452_v44 = vld [vmem:[#allocation2] sm:$0xff] }
  0x87   : > { %875 = vmatprep.mubr.f32.mxu1 %v527_v45 }
  0x8a   : > { %876 = vmatmul.mubr.f32.gmra.mrb[44].mxu1 %v526_v46 }
  0x8b   : > { %880 = vmatprep.mubr.f32.mxu1 %v531_v47 }
  0x8e   : > { %881 = vmatmul.mubr.f32.gmra.mrb[46].mxu1 %v530_v48 }
 0x105   : > { %v2011_v57 = vpop.f32.mrb[0].mxu1 }
 0x106   : > { %v1987_v58 = vpop.f32.mrb[0].mxu0  ;;  %v2012_v59 = vpop.f32.mrb[1].mxu1 }
 0x107   : > { %v1988_v60 = vpop.f32.mrb[1].mxu0  ;;  %v2933_v61 = vadd.f32 %v2012_v59, %v2011_v57  ;;  %v454_v57 = vld [vmem:[#allocation2 + $0x10] sm:$0xff] }
 0x108   : > { %v1989_v62 = vadd.f32 %v1988_v60, %v1987_v58  ;;  %v957_v58 = vpop.permute.xlu0 %956 }
 0x109   : > { %v2014_v63 = vpop.f32.mrb[2].mxu1 }
 0x10a   : > { %v1990_v0 = vpop.f32.mrb[2].mxu0  ;;  %v2015_v1 = vpop.f32.mrb[3].mxu1 }
 0x10b   : > { %v1991_v2 = vpop.f32.mrb[3].mxu0  ;;  %v2935_v3 = vadd.f32 %v2015_v1, %v2014_v63  ;;  %v455_v1 = vld [vmem:[#allocation2 + $0x18] sm:$0xff] }
 0x10c   : > { %v1992_v4 = vadd.f32 %v1991_v2, %v1990_v0 }
 0x10d   : > { %v2017_v5 = vpop.f32.mrb[4].mxu1 }
 0x10e   : > { %v1993_v6 = vpop.f32.mrb[4].mxu0  ;;  %v2018_v7 = vpop.f32.mrb[5].mxu1 }
 0x10f   : > { %v1994_v8 = vpop.f32.mrb[5].mxu0  ;;  %v2937_v9 = vadd.f32 %v2018_v7, %v2017_v5 }
 0x110   : > { %v1995_v10 = vadd.f32 %v1994_v8, %v1993_v6  ;;  %v962_v8 = vpop.permute.xlu0 %961 }
 0x111   : > { %v2020_v11 = vpop.f32.mrb[6].mxu1 }
 0x112   : > { %v1996_v12 = vpop.f32.mrb[6].mxu0  ;;  %v2021_v13 = vpop.f32.mrb[7].mxu1 }
 0x113   : > { %v1997_v14 = vpop.f32.mrb[7].mxu0  ;;  %v2939_v15 = vadd.f32 %v2021_v13, %v2020_v11  ;;  %v1068_v11 = vld [vmem:[%s3348_s4 + $0x10] sm:$0xff] }
 0x114   : > { %v1998_v16 = vadd.f32 %v1997_v14, %v1996_v12  ;;  %v456_v14 = vld [vmem:[#allocation2 + $0x20] sm:$0xff] }
 0x115   : > { %v2023_v17 = vpop.f32.mrb[8].mxu1 }
 0x116   : > { %v1999_v18 = vpop.f32.mrb[8].mxu0  ;;  %v2024_v19 = vpop.f32.mrb[9].mxu1 }
 0x117   : > { %v2000_v20 = vpop.f32.mrb[9].mxu0  ;;  %v2941_v21 = vadd.f32 %v2024_v19, %v2023_v17 }
 0x118   : > { %v2001_v22 = vadd.f32 %v2000_v20, %v1999_v18 }
 0x119   : > { %v2026_v23 = vpop.f32.mrb[10].mxu1 }
 0x11a   : > { %v2002_v24 = vpop.f32.mrb[10].mxu0  ;;  %v2027_v25 = vpop.f32.mrb[11].mxu1 }
 0x11b   : > { %v2003_v26 = vpop.f32.mrb[11].mxu0  ;;  %v2943_v27 = vadd.f32 %v2027_v25, %v2026_v23  ;;  %v967_v23 = vpop.permute.xlu1 %966 }
 0x11c   : > { %v2945_v28 = vadd.f32 %v2003_v26, %v2002_v24 }
 0x11d   : > { %v2029_v29 = vpop.f32.mrb[12].mxu1 }
 0x11e   : > { %v2005_v30 = vpop.f32.mrb[12].mxu0  ;;  %v2030_v31 = vpop.f32.mrb[13].mxu1 }
 0x11f   : > { %v2006_v32 = vpop.f32.mrb[13].mxu0  ;;  %v2947_v33 = vadd.f32 %v2030_v31, %v2029_v29 }
 0x120   : > { %v2949_v34 = vadd.f32 %v2006_v32, %v2005_v30  ;;  %v457_v30 = vld [vmem:[#allocation2 + $0x28] sm:$0xff] }
 0x121   : > { %v2032_v35 = vpop.f32.mrb[14].mxu1 }
 0x122   : > { %v2008_v36 = vpop.f32.mrb[14].mxu0  ;;  %v2033_v37 = vpop.f32.mrb[15].mxu1 }
 0x123   : > { %v2009_v38 = vpop.f32.mrb[15].mxu0  ;;  %v2951_v39 = vadd.f32 %v2033_v37, %v2032_v35 }
 0x124   : > { %v2953_v40 = vadd.f32 %v2009_v38, %v2008_v36  ;;  %v1070_v36 = vld [vmem:[%s3348_s4 + $0x20] sm:$0xff] }
 0x125   : > { %v2067_v41 = vpop.f32.mrb[16].mxu1 }
 0x126   : > { %v2068_v42 = vpop.f32.mrb[17].mxu1 }
 0x127   : > { %v2069_v43 = vadd.f32 %v2068_v42, %v2067_v41  ;;  %v972_v42 = vpop.permute.xlu1 %971 }
 0x129   : > { %v808_v45 = vadd.f32 %v2069_v43, %v1989_v62  ;;  %v2070_v46 = vpop.f32.mrb[18].mxu1  ;;  %v458_v43 = vld [vmem:[#allocation2 + $0x30] sm:$0xff] }
 0x12a   : > { %v2071_v47 = vpop.f32.mrb[19].mxu1 }
 0x12b   : > { %v886_v48 = vadd.f32 %v808_v45, %v452_v44  ;;  %v2072_v49 = vadd.f32 %v2071_v47, %v2070_v46 }
 0x12d   : > { %903 = vst.msk [vmem:[#allocation2] sm:$0xff] %vm435_vm0, %v886_v48  ;;  %v813_v51 = vadd.f32 %v2072_v49, %v1992_v4  ;;  %v2073_v52 = vpop.f32.mrb[20].mxu1  ;;  %v977_v49 = vpop.permute.xlu0 %976 }
 0x12e   : > { %v2074_v53 = vpop.f32.mrb[21].mxu1 }
 0x12f   : > { %v887_v54 = vadd.f32 %v813_v51, %v453_v50  ;;  %v2075_v55 = vadd.f32 %v2074_v53, %v2073_v52  ;;  %v459_v50 = vld [vmem:[#allocation2 + $0x38] sm:$0xff] }
 0x131   : > { %904 = vst.msk [vmem:[#allocation2 + $0x8] sm:$0xff] %vm435_vm0, %v887_v54  ;;  %v818_v59 = vadd.f32 %v2075_v55, %v1995_v10  ;;  %v2076_v60 = vpop.f32.mrb[22].mxu1  ;;  %v1069_v10 = vld [vmem:[%s3348_s4 + $0x18] sm:$0xff] }
 0x132   : > { %v2077_v63 = vpop.f32.mrb[23].mxu1  ;;  %v2291_v20 = vpack.c.bf16 %v1069_v10, %v1068_v11 }
 0x133   : > { %v888_v62 = vadd.f32 %v818_v59, %v454_v57  ;;  %v2078_v0 = vadd.f32 %v2077_v63, %v2076_v60  ;;  %v460_v59 = vld [vmem:[#allocation2 + $0x40] sm:$0xff] }
 0x134   : > { %v922_v2 = vld [vmem:[#allocation2] sm:$0xff] }
 0x135   : > { %905 = vst.msk [vmem:[#allocation2 + $0x10] sm:$0xff] %vm435_vm0, %v888_v62  ;;  %v823_v5 = vadd.f32 %v2078_v0, %v1998_v16  ;;  %v1034_v6 = vmul.f32 %v957_v58, %v922_v2  ;;  %v2079_v4 = vpop.f32.mrb[24].mxu1  ;;  %v982_v58 = vpop.permute.xlu1 %981 }
 0x136   : > { %v2080_v7 = vpop.f32.mrb[25].mxu1 }
 0x137   : > { %v889_v12 = vadd.f32 %v823_v5, %v455_v1  ;;  %v2081_v13 = vadd.f32 %v2080_v7, %v2079_v4  ;;  %2161 = vmatprep.mubr.msk.f32.mxu0 %vm435_vm0, %v1034_v6  ;;  %v987_v5 = vpop.permute.xlu0 %986  ;;  %v461_v6 = vld [vmem:[#allocation2 + $0x48] sm:$0xff] }
 0x138   : > { %v923_v17 = vld [vmem:[#allocation2 + $0x8] sm:$0xff] }
 0x139   : > { %906 = vst.msk [vmem:[#allocation2 + $0x18] sm:$0xff] %vm435_vm0, %v889_v12  ;;  %v828_v16 = vadd.f32 %v2081_v13, %v2001_v22  ;;  %v1035_v18 = vmul.f32 %v962_v8, %v923_v17  ;;  %v2082_v19 = vpop.f32.mrb[26].mxu1  ;;  %v992_v13 = vpop.permute.xlu1 %991 }
 0x13a   : > { %v2083_v24 = vpop.f32.mrb[27].mxu1 }
 0x13b   : > { %v890_v25 = vadd.f32 %v828_v16, %v456_v14  ;;  %v2084_v26 = vadd.f32 %v2083_v24, %v2082_v19  ;;  %2162 = vmatmul.mubr.msk.f32.vlgmr.msra.gmra.mrb[16].mxu0 %vm435_vm0, %v1035_v18  ;;  %v462_v14 = vld [vmem:[#allocation2 + $0x50] sm:$0xff]  ;;  %v463_v24 = vld [vmem:[#allocation2 + $0x58] sm:$0xff] }
 0x13c   : > { %v924_v29 = vld [vmem:[#allocation2 + $0x10] sm:$0xff]  ;;  %2290 = vmatpush3.bf16.msra.mxu0 %v2930_v56 }
 0x13d   : > { %907 = vst.msk [vmem:[#allocation2 + $0x20] sm:$0xff] %vm435_vm0, %v890_v25  ;;  %v1036_v31 = vmul.f32 %v967_v23, %v924_v29  ;;  %v833_v32 = vadd.f32 %v2084_v26, %v2945_v28  ;;  %v2085_v35 = vpop.f32.mrb[28].mxu1  ;;  %2292 = vmatprep.subr.bf16.mxu0 %v2291_v20 }
 0x13e   : > { %v2086_v22 = vpop.f32.mrb[29].mxu1 }
 0x13f   : > { %v891_v37 = vadd.f32 %v833_v32, %v457_v30  ;;  %v2087_v38 = vadd.f32 %v2086_v22, %v2085_v35  ;;  %2164 = vmatprep.mubr.msk.f32.mxu0 %vm435_vm0, %v1036_v31  ;;  %v464_v22 = vld [vmem:[#allocation2 + $0x60] sm:$0xff] }
 0x140   : > { %v925_v41 = vld [vmem:[#allocation2 + $0x18] sm:$0xff]  ;;  %2294 = vmatpush3.bf16.msra.mxu0 %v2291_v20 }
 0x141   : > { %908 = vst.msk [vmem:[#allocation2 + $0x28] sm:$0xff] %vm435_vm0, %v891_v37  ;;  %v1037_v56 = vmul.f32 %v972_v42, %v925_v41  ;;  %v838_v28 = vadd.f32 %v2087_v38, %v2949_v34  ;;  %v2088_v44 = vpop.f32.mrb[30].mxu1  ;;  %2193 = vmatprep.subr.mxu0 %v1070_v36 }
 0x142   : > { %v2089_v45 = vpop.f32.mrb[31].mxu1 }
 0x143   : > { %v892_v46 = vadd.f32 %v838_v28, %v458_v43  ;;  %v2090_v47 = vadd.f32 %v2089_v45, %v2088_v44  ;;  %2165 = vmatmul.mubr.msk.f32.gmra.mrb[18].mxu0 %vm435_vm0, %v1037_v56  ;;  %v465_v28 = vld [vmem:[#allocation2 + $0x68] sm:$0xff] }
 0x144   : > { %v926_v48 = vld [vmem:[#allocation2 + $0x20] sm:$0xff]  ;;  %2194 = vmatpush3.msra.mxu0 %v1070_v36 }
 0x145   : > { %v1038_v51 = vmul.f32 %v977_v49, %v926_v48  ;;  %909 = vst.msk [vmem:[#allocation2 + $0x30] sm:$0xff] %vm435_vm0, %v892_v46  ;;  %v843_v52 = vadd.f32 %v2090_v47, %v2953_v40  ;;  %v2091_v53 = vpop.f32.mrb[32].mxu1 }
 0x146   : > { %v2092_v54 = vpop.f32.mrb[33].mxu1 }
 0x147   : > { %v893_v55 = vadd.f32 %v843_v52, %v459_v50  ;;  %v2093_v34 = vadd.f32 %v2092_v54, %v2091_v53  ;;  %2167 = vmatprep.mubr.msk.f32.mxu0 %vm435_vm0, %v1038_v51  ;;  %v466_v51 = vld [vmem:[#allocation2 + $0x70] sm:$0xff] }
 0x148   : > { %v927_v57 = vld [vmem:[#allocation2 + $0x28] sm:$0xff] }
 0x149   : > { %v1039_v60 = vmul.f32 %v982_v58, %v927_v57  ;;  %910 = vst.msk [vmem:[#allocation2 + $0x38] sm:$0xff] %vm435_vm0, %v893_v55  ;;  %v848_v63 = vadd.f32 %v2093_v34, %v2933_v61  ;;  %v2094_v62 = vpop.f32.mrb[34].mxu1 }
 0x14a   : > { %v2095_v0 = vpop.f32.mrb[35].mxu1 }
 0x14b   : > { %v894_v1 = vadd.f32 %v848_v63, %v460_v59  ;;  %v2096_v2 = vadd.f32 %v2095_v0, %v2094_v62  ;;  %2168 = vmatmul.mubr.msk.f32.gmra.mrb[20].mxu0 %vm435_vm0, %v1039_v60  ;;  %v467_v59 = vld [vmem:[#allocation2 + $0x78] sm:$0xff] }
 0x14c   : > { %v928_v40 = vld [vmem:[#allocation2 + $0x30] sm:$0xff] }
 0x14d   : > { %v1040_v4 = vmul.f32 %v987_v5, %v928_v40  ;;  %911 = vst.msk [vmem:[#allocation2 + $0x40] sm:$0xff] %vm435_vm0, %v894_v1  ;;  %v853_v7 = vadd.f32 %v2096_v2, %v2935_v3  ;;  %v2097_v8 = vpop.f32.mrb[36].mxu1  ;;  %v997_v3 = vpop.permute.xlu0 %996 }
 0x14e   : > { %v2098_v11 = vpop.f32.mrb[37].mxu1 }
 0x14f   : > { %v895_v10 = vadd.f32 %v853_v7, %v461_v6  ;;  %v2099_v12 = vadd.f32 %v2098_v11, %v2097_v8  ;;  %2170 = vmatprep.mubr.msk.f32.mxu0 %vm435_vm0, %v1040_v4  ;;  %v1050_v8 = vld [vmem:[%s3011_s16] sm:$0xff]  ;;  %v1051_v11 = vld [vmem:[%s3011_s16 + $0x8] sm:$0xff] }
 0x150   : > { %v929_v61 = vld [vmem:[#allocation2 + $0x38] sm:$0xff] }
 0x151   : > { %v1041_v17 = vmul.f32 %v992_v13, %v929_v61  ;;  %912 = vst.msk [vmem:[#allocation2 + $0x48] sm:$0xff] %vm435_vm0, %v895_v10  ;;  %v858_v16 = vadd.f32 %v2099_v12, %v2937_v9  ;;  %v2100_v18 = vpop.f32.mrb[38].mxu1  ;;  %v1002_v9 = vpop.permute.xlu1 %1001  ;;  %v1052_v10 = vld [vmem:[%s3011_s16 + $0x10] sm:$0xff]  ;;  %v1053_v12 = vld [vmem:[%s3011_s16 + $0x18] sm:$0xff]  ;;  %v1054_v61 = vld [vmem:[%s3011_s16 + $0x20] sm:$0xff] }
 0x152   : > { %v2101_v19 = vpop.f32.mrb[39].mxu1  ;;  %v1055_v13 = vld [vmem:[%s3011_s16 + $0x28] sm:$0xff] }
 0x153   : > { %v896_v20 = vadd.f32 %v858_v16, %v462_v14  ;;  %v2102_v23 = vadd.f32 %v2101_v19, %v2100_v18  ;;  %2171 = vmatmul.mubr.msk.f32.gmra.mrb[22].mxu0 %vm435_vm0, %v1041_v17  ;;  %v1056_v14 = vld [vmem:[%s3011_s16 + $0x30] sm:$0xff]  ;;  %v1057_v17 = vld [vmem:[%s3011_s16 + $0x38] sm:$0xff]  ;;  %v1058_v16 = vld [vmem:[%s3011_s16 + $0x40] sm:$0xff] }
 0x154   : > { %v930_v25 = vld [vmem:[#allocation2 + $0x40] sm:$0xff]  ;;  %v1059_v18 = vld [vmem:[%s3011_s16 + $0x48] sm:$0xff]  ;;  %v1060_v19 = vld [vmem:[%s3011_s16 + $0x50] sm:$0xff] }
 0x155   : > { %913 = vst.msk [vmem:[#allocation2 + $0x50] sm:$0xff] %vm435_vm0, %v896_v20  ;;  %v863_v26 = vadd.f32 %v2102_v23, %v2939_v15  ;;  %v2103_v29 = vpop.f32.mrb[40].mxu1  ;;  %v1042_v30 = vmul.f32 %v997_v3, %v930_v25  ;;  %v1007_v15 = vpop.permute.xlu0 %1006  ;;  %v1061_v20 = vld [vmem:[%s3011_s16 + $0x58] sm:$0xff]  ;;  %v1062_v23 = vld [vmem:[%s3011_s16 + $0x60] sm:$0xff]  ;;  %v1063_v3 = vld [vmem:[%s3011_s16 + $0x68] sm:$0xff] }
 0x156   : > { %v2104_v31 = vpop.f32.mrb[41].mxu1  ;;  %v1065_v25 = vld [vmem:[%s3011_s16 + $0x78] sm:$0xff] }
 0x157   : > { %v897_v32 = vadd.f32 %v863_v26, %v463_v24  ;;  %v2105_v35 = vadd.f32 %v2104_v31, %v2103_v29  ;;  %2173 = vmatprep.mubr.msk.f32.mxu0 %vm435_vm0, %v1042_v30  ;;  %v1064_v24 = vld [vmem:[%s3011_s16 + $0x70] sm:$0xff]  ;;  %v3050_v26 = vld [vmem:[%s3350_s6] ss:$0 sm:$0xff] }
 0x158   : > { %v931_v36 = vld [vmem:[#allocation2 + $0x48] sm:$0xff] }
 0x159   : > { %914 = vst.msk [vmem:[#allocation2 + $0x58] sm:$0xff] %vm435_vm0, %v897_v32  ;;  %v868_v37 = vadd.f32 %v2105_v35, %v2941_v21  ;;  %v2106_v38 = vpop.f32.mrb[42].mxu1  ;;  %v1043_v41 = vmul.f32 %v1002_v9, %v931_v36  ;;  %v1012_v21 = vpop.permute.xlu1 %1011 }
 0x15a   : > { %v2107_v42 = vpop.f32.mrb[43].mxu1 }
 0x15b   : > { %v898_v43 = vadd.f32 %v868_v37, %v464_v22  ;;  %v2108_v56 = vadd.f32 %v2107_v42, %v2106_v38  ;;  %2174 = vmatmul.mubr.msk.f32.gmra.mrb[24].mxu0 %vm435_vm0, %v1043_v41 }
 0x15c   : > { %v932_v44 = vld [vmem:[#allocation2 + $0x50] sm:$0xff] }
 0x15d   : > { %915 = vst.msk [vmem:[#allocation2 + $0x60] sm:$0xff] %vm435_vm0, %v898_v43  ;;  %v873_v45 = vadd.f32 %v2108_v56, %v2943_v27  ;;  %v2109_v46 = vpop.f32.mrb[44].mxu1  ;;  %v1044_v47 = vmul.f32 %v1007_v15, %v932_v44  ;;  %v1017_v27 = vpop.permute.xlu0 %1016 }
 0x15e   : > { %v2110_v48 = vpop.f32.mrb[45].mxu1 }
 0x15f   : > { %v899_v49 = vadd.f32 %v873_v45, %v465_v28  ;;  %v2111_v50 = vadd.f32 %v2110_v48, %v2109_v46  ;;  %2176 = vmatprep.mubr.msk.f32.mxu0 %vm435_vm0, %v1044_v47 }
 0x160   : > { %v933_v52 = vld [vmem:[#allocation2 + $0x58] sm:$0xff] }
 0x161   : > { %916 = vst.msk [vmem:[#allocation2 + $0x68] sm:$0xff] %vm435_vm0, %v899_v49  ;;  %v878_v53 = vadd.f32 %v2111_v50, %v2947_v33  ;;  %v2112_v54 = vpop.f32.mrb[46].mxu1  ;;  %v1045_v55 = vmul.f32 %v1012_v21, %v933_v52  ;;  %v1022_v33 = vpop.permute.xlu1 %1021 }
 0x162   : > { %v2113_v34 = vpop.f32.mrb[47].mxu1  ;;  %v1027_v40 = vpop.permute.xlu0 %1026 }
 0x163   : > { %v900_v57 = vadd.f32 %v878_v53, %v466_v51  ;;  %v2114_v58 = vadd.f32 %v2113_v34, %v2112_v54  ;;  %2177 = vmatmul.mubr.msk.f32.gmra.mrb[26].mxu0 %vm435_vm0, %v1045_v55 }
 0x164   : > { %v934_v60 = vld [vmem:[#allocation2 + $0x60] sm:$0xff] }
 0x165   : > { %917 = vst.msk [vmem:[#allocation2 + $0x70] sm:$0xff] %vm435_vm0, %v900_v57  ;;  %v883_v63 = vadd.f32 %v2114_v58, %v2951_v39  ;;  %v1046_v62 = vmul.f32 %v1017_v27, %v934_v60  ;;  %v1032_v39 = vpop.permute.xlu1 %1031 }
 0x167   : > { %v901_v0 = vadd.f32 %v883_v63, %v467_v59  ;;  %2179 = vmatprep.mubr.msk.f32.mxu0 %vm435_vm0, %v1046_v62 }
 0x168   : > { %v935_v1 = vld [vmem:[#allocation2 + $0x68] sm:$0xff] }
 0x169   : > { %918 = vst.msk [vmem:[#allocation2 + $0x78] sm:$0xff] %vm435_vm0, %v901_v0  ;;  %v1047_v2 = vmul.f32 %v1022_v33, %v935_v1 }
 0x16b   : > { %2180 = vmatmul.mubr.msk.f32.gmra.mrb[28].mxu0 %vm435_vm0, %v1047_v2 }
 0x16c   : > { %v936_v5 = vld [vmem:[#allocation2 + $0x70] sm:$0xff] }
 0x16d   : > { %v1048_v6 = vmul.f32 %v1027_v40, %v936_v5 }
 0x16f   : > { %2182 = vmatprep.mubr.msk.f32.mxu0 %vm435_vm0, %v1048_v6 }
 0x170   : > { %v937_v4 = vld [vmem:[#allocation2 + $0x78] sm:$0xff] }
 0x171   : > { %v1049_v7 = vmul.f32 %v1032_v39, %v937_v4 }
 0x173   : > { %2183 = vmatmul.mubr.msk.f32.gmra.mrb[30].mxu0 %vm435_vm0, %v1049_v7 }
 0x174   : > { %2195 = vmatprep.mubr.msk.f32.mxu0 %vm1267_vm1, %v1050_v8 }
 0x177   : > { %2196 = vmatmul.mubr.msk.f32.vlgmr.msra.gmra.mrb[16].mxu0 %vm1267_vm1, %v1051_v11 }
 0x178   : > { %2198 = vmatprep.mubr.msk.f32.mxu0 %vm1267_vm1, %v1052_v10 }
 0x17b   : > { %2199 = vmatmul.mubr.msk.f32.gmra.mrb[18].mxu0 %vm1267_vm1, %v1053_v12 }
 0x17c   : > { %2201 = vmatprep.mubr.msk.f32.mxu0 %vm1267_vm1, %v1054_v61 }
 0x17f   : > { %2202 = vmatmul.mubr.msk.f32.gmra.mrb[20].mxu0 %vm1267_vm1, %v1055_v13 }
 0x180   : > { %2204 = vmatprep.mubr.msk.f32.mxu0 %vm1267_vm1, %v1056_v14 }
 0x183   : > { %2205 = vmatmul.mubr.msk.f32.gmra.mrb[22].mxu0 %vm1267_vm1, %v1057_v17 }
 0x184   : > { %2207 = vmatprep.mubr.msk.f32.mxu0 %vm1267_vm1, %v1058_v16 }
 0x187   : > { %2208 = vmatmul.mubr.msk.f32.gmra.mrb[24].mxu0 %vm1267_vm1, %v1059_v18 }
 0x188   : > { %2210 = vmatprep.mubr.msk.f32.mxu0 %vm1267_vm1, %v1060_v19 }
 0x18b   : > { %2211 = vmatmul.mubr.msk.f32.gmra.mrb[26].mxu0 %vm1267_vm1, %v1061_v20 }
 0x18c   : > { %2213 = vmatprep.mubr.msk.f32.mxu0 %vm1267_vm1, %v1062_v23 }
 0x18f   : > { %2214 = vmatmul.mubr.msk.f32.gmra.mrb[28].mxu0 %vm1267_vm1, %v1063_v3 }
 0x190   : > { %2216 = vmatprep.mubr.msk.f32.mxu0 %vm1267_vm1, %v1064_v24 }
 0x193   : > { %2217 = vmatmul.mubr.msk.f32.gmra.mrb[30].mxu0 %vm1267_vm1, %v1065_v25 }
 0x24a   : > { %v2197_v29 = vpop.f32.mrb[16].mxu0 }
 0x24b   : > { %v3053_v30 = vadd.f32 %v2197_v29, %v3050_v26  ;;  %v1382_v31 = vpop.f32.mrb[17].mxu0 }
 0x24c   : > { %v3056_v32 = vadd.f32 %v3050_v26, %v1382_v31 }
 0x24d   : > { %1486 = vadd.xlane.f32.xlu1 %v3053_v30  ;;  %v1533_v37 = vmul.f32 %v3053_v30, %v3053_v30 }
 0x24e   : > { %1484 = vadd.xlane.f32.xlu0 %v3056_v32  ;;  %v2200_v35 = vpop.f32.mrb[18].mxu0  ;;  %v1532_v9 = vmul.f32 %v3056_v32, %v3056_v32 }
 0x24f   : > { %v1392_v22 = vpop.f32.mrb[19].mxu0  ;;  %v3070_v43 = vadd.f32 %v2200_v35, %v3050_v26 }
 0x250   : > { %v3063_v36 = vadd.f32 %v3050_v26, %v1392_v22 }
 0x251   : > { %1548 = vadd.xlane.f32.xlu1 %v1532_v9  ;;  %v1535_v47 = vmul.f32 %v3070_v43, %v3070_v43 }
 0x252   : > { %1550 = vadd.xlane.f32.xlu0 %v1533_v37  ;;  %v2203_v38 = vpop.f32.mrb[20].mxu0  ;;  %v1534_v41 = vmul.f32 %v3063_v36, %v3063_v36 }
 0x253   : > { %v1402_v42 = vpop.f32.mrb[21].mxu0  ;;  %v3086_v21 = vadd.f32 %v2203_v38, %v3050_v26 }
 0x254   : > { %v3074_v15 = vadd.f32 %v3050_v26, %v1402_v42 }
 0x255   : > { %1552 = vadd.xlane.f32.xlu1 %v1534_v41  ;;  %v1537_v54 = vmul.f32 %v3086_v21, %v3086_v21 }
 0x256   : > { %1490 = vadd.xlane.f32.xlu0 %v3070_v43  ;;  %v2206_v56 = vpop.f32.mrb[22].mxu0  ;;  %v1536_v46 = vmul.f32 %v3074_v15, %v3074_v15 }
 0x257   : > { %v1412_v28 = vpop.f32.mrb[23].mxu0  ;;  %v3098_v58 = vadd.f32 %v2206_v56, %v3050_v26 }
 0x258   : > { %v3083_v49 = vadd.f32 %v3050_v26, %v1412_v28 }
 0x259   : > { %1492 = vadd.xlane.f32.xlu1 %v3074_v15  ;;  %v1539_v59 = vmul.f32 %v3098_v58, %v3098_v58 }
 0x25a   : > { %1488 = vadd.xlane.f32.xlu0 %v3063_v36  ;;  %v2209_v44 = vpop.f32.mrb[24].mxu0  ;;  %v1538_v53 = vmul.f32 %v3083_v49, %v3083_v49 }
 0x25b   : > { %v1422_v45 = vpop.f32.mrb[25].mxu0  ;;  %v3110_v63 = vadd.f32 %v2209_v44, %v3050_v26 }
 0x25c   : > { %v3095_v34 = vadd.f32 %v3050_v26, %v1422_v45 }
 0x25d   : > { %1556 = vadd.xlane.f32.xlu1 %v1536_v46  ;;  %v1541_v0 = vmul.f32 %v3110_v63, %v3110_v63 }
 0x25e   : > { %1554 = vadd.xlane.f32.xlu0 %v1535_v47  ;;  %v2212_v48 = vpop.f32.mrb[26].mxu0  ;;  %v1540_v27 = vmul.f32 %v3095_v34, %v3095_v34 }
 0x25f   : > { %v1432_v50 = vpop.f32.mrb[27].mxu0  ;;  %v3122_v1 = vadd.f32 %v2212_v48, %v3050_v26 }
 0x260   : > { %v3107_v60 = vadd.f32 %v3050_v26, %v1432_v50 }
 0x261   : > { %1496 = vadd.xlane.f32.xlu1 %v3083_v49  ;;  %v1543_v40 = vmul.f32 %v3122_v1, %v3122_v1 }
 0x262   : > { %1494 = vadd.xlane.f32.xlu0 %v3086_v21  ;;  %v2215_v51 = vpop.f32.mrb[28].mxu0  ;;  %v1542_v62 = vmul.f32 %v3107_v60, %v3107_v60 }
 0x263   : > { %v1442_v52 = vpop.f32.mrb[29].mxu0  ;;  %v3134_v6 = vadd.f32 %v2215_v51, %v3050_v26 }
 0x264   : > { %v3119_v33 = vadd.f32 %v3050_v26, %v1442_v52 }
 0x265   : > { %1560 = vadd.xlane.f32.xlu1 %v1538_v53  ;;  %v1545_v4 = vmul.f32 %v3134_v6, %v3134_v6 }
 0x266   : > { %1558 = vadd.xlane.f32.xlu0 %v1537_v54  ;;  %v2218_v55 = vpop.f32.mrb[30].mxu0  ;;  %v1544_v2 = vmul.f32 %v3119_v33, %v3119_v33 }
 0x267   : > { %v1452_v57 = vpop.f32.mrb[31].mxu0  ;;  %v3143_v7 = vadd.f32 %v2218_v55, %v3050_v26  ;;  %v3165_v55 = vld [vmem:[%s3351_s7] ss:$0 sm:$0xff] }
 0x268   : > { %v3131_v5 = vadd.f32 %v3050_v26, %v1452_v57 }
 0x269   : > { %1500 = vadd.xlane.f32.xlu1 %v3095_v34  ;;  %v1547_v8 = vmul.f32 %v3143_v7, %v3143_v7 }
 0x26a   : > { %1498 = vadd.xlane.f32.xlu0 %v3098_v58  ;;  %v1546_v39 = vmul.f32 %v3131_v5, %v3131_v5 }
 0x26d   : > { %1564 = vadd.xlane.f32.xlu1 %v1540_v27 }
 0x26e   : > { %1562 = vadd.xlane.f32.xlu0 %v1539_v59 }
 0x271   : > { %1504 = vadd.xlane.f32.xlu1 %v3107_v60 }
 0x272   : > { %1502 = vadd.xlane.f32.xlu0 %v3110_v63 }
 0x275   : > { %1568 = vadd.xlane.f32.xlu1 %v1542_v62 }
 0x276   : > { %1566 = vadd.xlane.f32.xlu0 %v1541_v0 }
 0x279   : > { %1508 = vadd.xlane.f32.xlu1 %v3119_v33 }
 0x27a   : > { %1506 = vadd.xlane.f32.xlu0 %v3122_v1 }
 0x27d   : > { %1572 = vadd.xlane.f32.xlu1 %v1544_v2 }
 0x27e   : > { %1570 = vadd.xlane.f32.xlu0 %v1543_v40 }
 0x281   : > { %1512 = vadd.xlane.f32.xlu1 %v3131_v5 }
 0x282   : > { %1510 = vadd.xlane.f32.xlu0 %v3134_v6 }
 0x285   : > { %1576 = vadd.xlane.f32.xlu1 %v1546_v39 }
 0x286   : > { %1574 = vadd.xlane.f32.xlu0 %v1545_v4 }
 0x28a   : > { %1514 = vadd.xlane.f32.xlu0 %v3143_v7 }
 0x28e   : > { %1578 = vadd.xlane.f32.xlu0 %v1547_v8 }
 0x2da   : > { %v1487_v11 = vpop.xlane.xlu1 %1486 }
 0x2db   : > { %v1485_v10 = vpop.xlane.xlu0 %1484  ;;  %v1517_v12 = vmul.f32 0.03125, %v1487_v11 }
 0x2dc   : > { %v1516_v61 = vmul.f32 0.03125, %v1485_v10 }
 0x2dd   : > { %v1597_v18 = vmul.f32 %v1517_v12, %v1517_v12  ;;  %v1629_v54 = vsub.f32 %v3053_v30, %v1517_v12  ;;  %v3175_v30 = vld [vmem:[%s3352_s8] ss:$0 sm:$0xff] }
 0x2de   : > { %v1596_v13 = vmul.f32 %v1516_v61, %v1516_v61  ;;  %v1549_v14 = vpop.xlane.xlu1 %1548  ;;  %v1628_v48 = vsub.f32 %v3056_v32, %v1516_v61 }
 0x2df   : > { %v1580_v17 = vmul.f32 0.03125, %v1549_v14  ;;  %v1551_v16 = vpop.xlane.xlu0 %1550 }
 0x2e0   : > { %v1581_v19 = vmul.f32 0.03125, %v1551_v16 }
 0x2e1   : > { %v1612_v20 = vsub.f32 %v1580_v17, %v1596_v13 }
 0x2e2   : > { %v1613_v23 = vsub.f32 %v1581_v19, %v1597_v18  ;;  %v1553_v3 = vpop.xlane.xlu1 %1552 }
 0x2e3   : > { %v1644_v24 = vadd.f32 1e-05, %v1612_v20  ;;  %v1491_v25 = vpop.xlane.xlu0 %1490  ;;  %v1582_v37 = vmul.f32 0.03125, %v1553_v3 }
 0x2e4   : > { %v1645_v26 = vadd.f32 1e-05, %v1613_v23  ;;  %v3150_v9 = vmul.f32 0.03125, %v1491_v25 }
 0x2e5   : > { %2388 = vrsqrt.f32 %v1644_v24 }
 0x2e6   : > { %2390 = vrsqrt.f32 %v1645_v26  ;;  %v1493_v29 = vpop.xlane.xlu1 %1492  ;;  %v1599_v44 = vmul.f32 %v3150_v9, %v3150_v9 }
 0x2e7   : > { %v3148_v31 = vmul.f32 0.03125, %v1493_v29  ;;  %v1489_v35 = vpop.xlane.xlu0 %1488 }
 0x2e8   : > { %v3152_v22 = vmul.f32 0.03125, %v1489_v35 }
 0x2e9   : > { %v1600_v42 = vmul.f32 %v3148_v31, %v3148_v31 }
 0x2ea   : > { %v1598_v38 = vmul.f32 %v3152_v22, %v3152_v22  ;;  %v1557_v41 = vpop.xlane.xlu1 %1556  ;;  %v1630_v35 = vsub.f32 %v3063_v36, %v3152_v22 }
 0x2eb   : > { %v1584_v56 = vmul.f32 0.03125, %v1557_v41  ;;  %v1555_v28 = vpop.xlane.xlu0 %1554 }
 0x2ec   : > { %v1614_v45 = vsub.f32 %v1582_v37, %v1598_v38  ;;  %v1583_v46 = vmul.f32 0.03125, %v1555_v28  ;;  %v1632_v38 = vsub.f32 %v3074_v15, %v3148_v31 }
 0x2ed   : > { %v1616_v47 = vsub.f32 %v1584_v56, %v1600_v42  ;;  %v1631_v56 = vsub.f32 %v3070_v43, %v3150_v9 }
 0x2ee   : > { %v1646_v50 = vadd.f32 1e-05, %v1614_v45  ;;  %v1615_v51 = vsub.f32 %v1583_v46, %v1599_v44  ;;  %v1497_v52 = vpop.xlane.xlu1 %1496 }
 0x2ef   : > { %v2389_v53 = vpop.eup %2388  ;;  %v1648_v57 = vadd.f32 1e-05, %v1616_v47  ;;  %v3168_v27 = vmul.f32 0.03125, %v1497_v52  ;;  %v1495_v59 = vpop.xlane.xlu0 %1494 }
 0x2f0   : > { %v2391_v62 = vpop.eup %2390  ;;  %v1676_v0 = vmul.f32 %v2389_v53, %v1628_v48  ;;  %2392 = vrsqrt.f32 %v1646_v50  ;;  %v1647_v32 = vadd.f32 1e-05, %v1615_v51  ;;  %v3170_v2 = vmul.f32 0.03125, %v1495_v59 }
 0x2f1   : > { %v1677_v40 = vmul.f32 %v2391_v62, %v1629_v54  ;;  %2394 = vrsqrt.f32 %v1648_v57  ;;  %v1602_v11 = vmul.f32 %v3168_v27, %v3168_v27 }
 0x2f2   : > { %v1699_v39 = vmul.f32 %v3165_v55, %v1676_v0  ;;  %2396 = vrsqrt.f32 %v1647_v32  ;;  %v1561_v4 = vpop.xlane.xlu1 %1560  ;;  %v1601_v13 = vmul.f32 %v3170_v2, %v3170_v2 }
 0x2f3   : > { %v1700_v8 = vmul.f32 %v3165_v55, %v1677_v40  ;;  %v1586_v10 = vmul.f32 0.03125, %v1561_v4  ;;  %v1559_v12 = vpop.xlane.xlu0 %1558 }
 0x2f4   : > { %v1722_v61 = vadd.f32 %v3175_v30, %v1699_v39  ;;  %v1585_v14 = vmul.f32 0.03125, %v1559_v12 }
 0x2f5   : > { %v1723_v17 = vadd.f32 %v3175_v30, %v1700_v8  ;;  %v1618_v16 = vsub.f32 %v1586_v10, %v1602_v11  ;;  %v1634_v8 = vsub.f32 %v3083_v49, %v3168_v27 }
 0x2f6   : > { %v1738_v18 = vmax.f32 %v1722_v61, 0.0  ;;  %v1617_v19 = vsub.f32 %v1585_v14, %v1601_v13  ;;  %v1501_v20 = vpop.xlane.xlu1 %1500  ;;  %v1633_v61 = vsub.f32 %v3086_v21, %v3170_v2 }
 0x2f7   : > { %v1739_v23 = vmax.f32 %v1723_v17, 0.0  ;;  %v1650_v3 = vadd.f32 1e-05, %v1618_v16  ;;  %v3187_v24 = vmul.f32 0.03125, %v1501_v20  ;;  %v1499_v25 = vpop.xlane.xlu0 %1498 }
 0x2f8   : > { %1754 = vst [vmem:[%s3189_s26] sm:$0xff] %v1738_v18  ;;  %v1649_v26 = vadd.f32 1e-05, %v1617_v19  ;;  %v3192_v29 = vmul.f32 0.03125, %v1499_v25 }
 0x2f9   : > { %1755 = vst [vmem:[%s3189_s26 + $0x8] sm:$0xff] %v1739_v23  ;;  %2398 = vrsqrt.f32 %v1650_v3  ;;  %v1604_v44 = vmul.f32 %v3187_v24, %v3187_v24 }
 0x2fa   : > { %v2393_v37 = vpop.eup %2392  ;;  %2400 = vrsqrt.f32 %v1649_v26  ;;  %v1565_v41 = vpop.xlane.xlu1 %1564  ;;  %v1603_v36 = vmul.f32 %v3192_v29, %v3192_v29 }
 0x2fb   : > { %v2395_v42 = vpop.eup %2394  ;;  %v1678_v28 = vmul.f32 %v2393_v37, %v1630_v35  ;;  %v1588_v45 = vmul.f32 0.03125, %v1565_v41  ;;  %v1563_v46 = vpop.xlane.xlu0 %1562 }
 0x2fc   : > { %v2397_v47 = vpop.eup %2396  ;;  %v1680_v48 = vmul.f32 %v2395_v42, %v1632_v38  ;;  %v1587_v22 = vmul.f32 0.03125, %v1563_v46 }
 0x2fd   : > { %v1701_v15 = vmul.f32 %v3165_v55, %v1678_v28  ;;  %v1679_v31 = vmul.f32 %v2397_v47, %v1631_v56  ;;  %v1620_v50 = vsub.f32 %v1588_v45, %v1604_v44  ;;  %v1636_v28 = vsub.f32 %v3095_v34, %v3187_v24 }
 0x2fe   : > { %v1703_v51 = vmul.f32 %v3165_v55, %v1680_v48  ;;  %v1619_v52 = vsub.f32 %v1587_v22, %v1603_v36  ;;  %v1505_v43 = vpop.xlane.xlu1 %1504  ;;  %v1635_v47 = vsub.f32 %v3098_v58, %v3192_v29 }
 0x2ff   : > { %v1724_v9 = vadd.f32 %v3175_v30, %v1701_v15  ;;  %v1702_v53 = vmul.f32 %v3165_v55, %v1679_v31  ;;  %v1652_v54 = vadd.f32 1e-05, %v1620_v50  ;;  %v3209_v57 = vmul.f32 0.03125, %v1505_v43  ;;  %v1503_v59 = vpop.xlane.xlu0 %1502 }
 0x300   : > { %v1726_v62 = vadd.f32 %v3175_v30, %v1703_v51  ;;  %v1651_v0 = vadd.f32 1e-05, %v1619_v52  ;;  %v3212_v32 = vmul.f32 0.03125, %v1503_v59 }
 0x301   : > { %v1740_v40 = vmax.f32 %v1724_v9, 0.0  ;;  %v1725_v39 = vadd.f32 %v3175_v30, %v1702_v53  ;;  %2402 = vrsqrt.f32 %v1652_v54  ;;  %v1606_v13 = vmul.f32 %v3209_v57, %v3209_v57 }
 0x302   : > { %v1742_v4 = vmax.f32 %v1726_v62, 0.0  ;;  %2404 = vrsqrt.f32 %v1651_v0  ;;  %v1569_v11 = vpop.xlane.xlu1 %1568  ;;  %v1605_v19 = vmul.f32 %v3212_v32, %v3212_v32 }
 0x303   : > { %v2399_v10 = vpop.eup %2398  ;;  %1756 = vst [vmem:[%s3189_s26 + $0x10] sm:$0xff] %v1740_v40  ;;  %v1741_v12 = vmax.f32 %v1725_v39, 0.0  ;;  %v1590_v14 = vmul.f32 0.03125, %v1569_v11  ;;  %v1567_v17 = vpop.xlane.xlu0 %1566 }
 0x304   : > { %v2401_v16 = vpop.eup %2400  ;;  %1758 = vst [vmem:[%s3189_s26 + $0x20] sm:$0xff] %v1742_v4  ;;  %v1682_v18 = vmul.f32 %v2399_v10, %v1634_v8  ;;  %v1589_v49 = vmul.f32 0.03125, %v1567_v17  ;;  %v1638_v4 = vsub.f32 %v3107_v60, %v3209_v57 }
 0x305   : > { %1757 = vst [vmem:[%s3189_s26 + $0x18] sm:$0xff] %v1741_v12  ;;  %v1681_v27 = vmul.f32 %v2401_v16, %v1633_v61  ;;  %v1622_v20 = vsub.f32 %v1590_v14, %v1606_v13  ;;  %v1637_v12 = vsub.f32 %v3110_v63, %v3212_v32 }
 0x306   : > { %v1705_v23 = vmul.f32 %v3165_v55, %v1682_v18  ;;  %v1621_v3 = vsub.f32 %v1589_v49, %v1605_v19  ;;  %v1509_v25 = vpop.xlane.xlu1 %1508 }
 0x307   : > { %v1704_v21 = vmul.f32 %v3165_v55, %v1681_v27  ;;  %v1654_v2 = vadd.f32 1e-05, %v1622_v20  ;;  %v3228_v26 = vmul.f32 0.03125, %v1509_v25  ;;  %v1507_v35 = vpop.xlane.xlu0 %1506 }
 0x308   : > { %v1728_v37 = vadd.f32 %v3175_v30, %v1705_v23  ;;  %v1653_v38 = vadd.f32 1e-05, %v1621_v3  ;;  %v3231_v41 = vmul.f32 0.03125, %v1507_v35 }
 0x309   : > { %v1727_v42 = vadd.f32 %v3175_v30, %v1704_v21  ;;  %2406 = vrsqrt.f32 %v1654_v2  ;;  %v1608_v48 = vmul.f32 %v3228_v26, %v3228_v26  ;;  %v1640_v35 = vsub.f32 %v3119_v33, %v3228_v26 }
 0x30a   : > { %v1744_v56 = vmax.f32 %v1728_v37, 0.0  ;;  %2408 = vrsqrt.f32 %v1653_v38  ;;  %v1573_v44 = vpop.xlane.xlu1 %1572  ;;  %v1607_v50 = vmul.f32 %v3231_v41, %v3231_v41 }
 0x30b   : > { %v2403_v45 = vpop.eup %2402  ;;  %v1743_v46 = vmax.f32 %v1727_v42, 0.0  ;;  %v1592_v36 = vmul.f32 0.03125, %v1573_v44  ;;  %v1571_v22 = vpop.xlane.xlu0 %1570  ;;  %v1639_v42 = vsub.f32 %v3122_v1, %v3231_v41 }
 0x30c   : > { %v2405_v15 = vpop.eup %2404  ;;  %1760 = vst [vmem:[%s3189_s26 + $0x30] sm:$0xff] %v1744_v56  ;;  %v1684_v31 = vmul.f32 %v2403_v45, %v1636_v28  ;;  %v1591_v51 = vmul.f32 0.03125, %v1571_v22 }
 0x30d   : > { %1759 = vst [vmem:[%s3189_s26 + $0x28] sm:$0xff] %v1743_v46  ;;  %v1683_v34 = vmul.f32 %v2405_v15, %v1635_v47  ;;  %v1624_v24 = vsub.f32 %v1592_v36, %v1608_v48 }
 0x30e   : > { %v1707_v52 = vmul.f32 %v3165_v55, %v1684_v31  ;;  %v1623_v43 = vsub.f32 %v1591_v51, %v1607_v50  ;;  %v1513_v9 = vpop.xlane.xlu1 %1512 }
 0x30f   : > { %v1706_v58 = vmul.f32 %v3165_v55, %v1683_v34  ;;  %v1656_v29 = vadd.f32 1e-05, %v1624_v24  ;;  %v3246_v53 = vmul.f32 0.03125, %v1513_v9  ;;  %v1511_v54 = vpop.xlane.xlu0 %1510 }
 0x310   : > { %v1730_v59 = vadd.f32 %v3175_v30, %v1707_v52  ;;  %v1655_v62 = vadd.f32 1e-05, %v1623_v43  ;;  %v1529_v0 = vmul.f32 0.03125, %v1511_v54 }
 0x311   : > { %v1729_v40 = vadd.f32 %v3175_v30, %v1706_v58  ;;  %2410 = vrsqrt.f32 %v1656_v29  ;;  %v1610_v61 = vmul.f32 %v3246_v53, %v3246_v53  ;;  %v1642_v15 = vsub.f32 %v3131_v5, %v3246_v53 }
 0x312   : > { %v1746_v39 = vmax.f32 %v1730_v59, 0.0  ;;  %2412 = vrsqrt.f32 %v1655_v62  ;;  %v1577_v8 = vpop.xlane.xlu1 %1576  ;;  %v1609_v18 = vmul.f32 %v1529_v0, %v1529_v0  ;;  %v1641_v51 = vsub.f32 %v3134_v6, %v1529_v0 }
 0x313   : > { %v2407_v11 = vpop.eup %2406  ;;  %v1745_v10 = vmax.f32 %v1729_v40, 0.0  ;;  %v1594_v13 = vmul.f32 0.03125, %v1577_v8  ;;  %v1575_v14 = vpop.xlane.xlu0 %1574 }
 0x314   : > { %v2409_v17 = vpop.eup %2408  ;;  %1762 = vst [vmem:[%s3189_s26 + $0x40] sm:$0xff] %v1746_v39  ;;  %v1686_v16 = vmul.f32 %v2407_v11, %v1638_v4  ;;  %v1593_v19 = vmul.f32 0.03125, %v1575_v14 }
 0x315   : > { %1761 = vst [vmem:[%s3189_s26 + $0x38] sm:$0xff] %v1745_v10  ;;  %v1685_v49 = vmul.f32 %v2409_v17, %v1637_v12  ;;  %v1626_v60 = vsub.f32 %v1594_v13, %v1610_v61 }
 0x316   : > { %v1709_v57 = vmul.f32 %v3165_v55, %v1686_v16  ;;  %v1625_v27 = vsub.f32 %v1593_v19, %v1609_v18 }
 0x317   : > { %v1708_v20 = vmul.f32 %v3165_v55, %v1685_v49  ;;  %v1658_v63 = vadd.f32 1e-05, %v1626_v60  ;;  %v1515_v32 = vpop.xlane.xlu0 %1514 }
 0x318   : > { %v1732_v23 = vadd.f32 %v3175_v30, %v1709_v57  ;;  %v1657_v3 = vadd.f32 1e-05, %v1625_v27  ;;  %v1531_v25 = vmul.f32 0.03125, %v1515_v32 }
 0x319   : > { %v1731_v21 = vadd.f32 %v3175_v30, %v1708_v20  ;;  %2414 = vrsqrt.f32 %v1658_v63 }
 0x31a   : > { %v1748_v2 = vmax.f32 %v1732_v23, 0.0  ;;  %2416 = vrsqrt.f32 %v1657_v3  ;;  %v1611_v45 = vmul.f32 %v1531_v25, %v1531_v25  ;;  %v1643_v6 = vsub.f32 %v3143_v7, %v1531_v25 }
 0x31b   : > { %v2411_v37 = vpop.eup %2410  ;;  %v1747_v38 = vmax.f32 %v1731_v21, 0.0  ;;  %v1579_v56 = vpop.xlane.xlu0 %1578 }
 0x31c   : > { %v2413_v28 = vpop.eup %2412  ;;  %1764 = vst [vmem:[%s3189_s26 + $0x50] sm:$0xff] %v1748_v2  ;;  %v1688_v44 = vmul.f32 %v2411_v37, %v1640_v35  ;;  %v1595_v46 = vmul.f32 0.03125, %v1579_v56 }
 0x31d   : > { %1763 = vst [vmem:[%s3189_s26 + $0x48] sm:$0xff] %v1747_v38  ;;  %v1687_v47 = vmul.f32 %v2413_v28, %v1639_v42 }
 0x31e   : > { %v1711_v48 = vmul.f32 %v3165_v55, %v1688_v44  ;;  %v1627_v36 = vsub.f32 %v1595_v46, %v1611_v45 }
 0x31f   : > { %v1710_v33 = vmul.f32 %v3165_v55, %v1687_v47 }
 0x320   : > { %v1734_v26 = vadd.f32 %v3175_v30, %v1711_v48  ;;  %v1659_v22 = vadd.f32 1e-05, %v1627_v36 }
 0x321   : > { %v1733_v1 = vadd.f32 %v3175_v30, %v1710_v33 }
 0x322   : > { %v1750_v41 = vmax.f32 %v1734_v26, 0.0  ;;  %2418 = vrsqrt.f32 %v1659_v22 }
 0x323   : > { %v2415_v31 = vpop.eup %2414  ;;  %v1749_v50 = vmax.f32 %v1733_v1, 0.0 }
 0x324   : > { %v2417_v34 = vpop.eup %2416  ;;  %1766 = vst [vmem:[%s3189_s26 + $0x60] sm:$0xff] %v1750_v41  ;;  %v1690_v24 = vmul.f32 %v2415_v31, %v1642_v15 }
 0x325   : > { %1765 = vst [vmem:[%s3189_s26 + $0x58] sm:$0xff] %v1749_v50  ;;  %v1689_v52 = vmul.f32 %v2417_v34, %v1641_v51 }
 0x326   : > { %v1713_v43 = vmul.f32 %v3165_v55, %v1690_v24 }
 0x327   : > { %v1712_v9 = vmul.f32 %v3165_v55, %v1689_v52 }
 0x328   : > { %v1736_v5 = vadd.f32 %v3175_v30, %v1713_v43 }
 0x329   : > { %v1735_v58 = vadd.f32 %v3175_v30, %v1712_v9 }
 0x32a   : > { %v1752_v29 = vmax.f32 %v1736_v5, 0.0 }
 0x32b   : > { %v1751_v53 = vmax.f32 %v1735_v58, 0.0 }
 0x32c   : > { %v2419_v54 = vpop.eup %2418  ;;  %1768 = vst [vmem:[%s3189_s26 + $0x70] sm:$0xff] %v1752_v29 }
 0x32d   : > { %1767 = vst [vmem:[%s3189_s26 + $0x68] sm:$0xff] %v1751_v53  ;;  %v1691_v59 = vmul.f32 %v2419_v54, %v1643_v6 }
 0x32f   : > { %v1714_v62 = vmul.f32 %v3165_v55, %v1691_v59 }
 0x331   : > { %v1737_v0 = vadd.f32 %v3175_v30, %v1714_v62 }
 0x333   : > { %v1753_v7 = vmax.f32 %v1737_v0, 0.0 }
 0x335   : > { %1769 = vst [vmem:[%s3189_s26 + $0x78] sm:$0xff] %v1753_v7 }
 0x336   : > { %2433 = shalt.err (!%p2430_p5)
}
 0x337   : > { %s2434_s23 = scalar_lea.hbm %s3291_s29, 2048  ;;  %s2438_s26 = scalar_lea.hbm %s3353_s9, 4096 }
 0x338   : > { %p2435_p6 = scmp.ne.s32.totalorder %s3291_s29, %s2434_s23  ;;  %p2439_p10 = scmp.lt.u32.totalorder %s3291_s29, %s3353_s9 }
 0x339   : > { %p2440_p11 = scmp.lt.u32.totalorder %s2438_s26, %s2434_s23  ;;  %p2442_p13 = scmp.lt.u32.totalorder %s2434_s23, %s3291_s29 }
 0x33a   : > { %p2436_p7 = pnand %p2435_p6, %p2595_p4 }
 0x33b   : > { %p2441_p12 = por %p2440_p11, %p2439_p10 }
 0x33c   : > { %p2437_p9 = pneg %p2436_p7 }
 0x33d   : > { %p2443_p0 = por %p2442_p13, %p2441_p12 }
 0x33f   : > { %p2444_p1 = pnand %p2443_p0, %p2437_p9 }
 0x341   : > { %2447 = shalt.err (!%p2444_p1)
}
 0x342   : > { %s2503_s16 = smov 128   ;;  %s2504_s18 = smov 8  }
 0x343   : > { %2327 = dma.vmem_to_hbm [thread:$0]  (%p2595_p4), %s3293_s17, 2048, %s3291_s29, %s3298_s15, %s2503_s16, %s2503_s16, %s2504_s18  }
 0x344 PF: > { %p2333_p2 = scmp.ge.s32.totalorder %s2498_s14, 2  ;;  %s1799_s12 = sand.u32 1, %s2478_s30  }
 0x345   : > { %s1800_s20 = scalar_lea.sflag [#allocation4], %s1799_s12 }
 0x346   : > { %p2330_p3 = pnand %p2333_p2, %p2602_p8 }
 0x348   : > { %2473 = dma.done.wait (!%p2330_p3), %s1800_s20, 2048  }
 0x349   : > { %2475 = vsyncadd (!%p2330_p3), %s1800_s20, 4294965248  ;;  %s22_s14 = sadd.s32 1, %s2498_s14   ;;  %s3360_s12 = sld [smem:[#allocation6_spill]] }
 0x34a   : > { %p19_p5 = scmp.ge.s32.totalorder %s22_s14, 4   ;;  %s3361_s13 = sld [smem:[#allocation7_spill]] }
 0x34b   : > { %s3362_s30 = smov %s2482_s10  ;;  %s3363_s10 = smov %s2486_s11 }
 0x34c   : > { %s3364_s11 = smov %s2608_s22  ;;  %21 = sbr.rel (!%p19_p5) target bundleno = 4 (0x4), region = 108 }
 0x353   :  { %1805 = vsyncpa [#allocation4], 1 }
 0x354   :  { %1807 = vsyncpa [#allocation4 + $0x1], 1 }

</bundles_post_ra>
